<compile_context>
chip_gen: v7x
topology: tpu7x:2x2x1
jax: 0.10.0
libtpu: 0.0.40
codegen_flags: <defaults>
</compile_context>

<pallas_src>
import functools

import jax
import jax.numpy as jnp
from jax.experimental import pallas as pl
from jax.experimental.pallas import tpu as pltpu

INPUT_SIZE = 5
PAD_IN = 8                      # feature dim padded 5 -> 8 for aligned rows
H1, H2, H3, OUT = 128, 64, 32, 1
BN_EPS = 1e-5


def _round_up(n, m):
    return ((n + m - 1) // m) * m


def _batch_tiling(batch, tile_b):
    """Batch tile (multiple of 128) and padded batch; keeps >= 2 grid steps."""
    b_min = _round_up(max(int(batch), 1), 128)
    tb = _round_up(max(min(int(tile_b), b_min), 128), 128)
    if b_min > 128:
        # Cap at ceil(batch/2) so the "parallel" grid axis has >= 2 steps and
        # v7x can shard them across both TensorCores.
        tb = min(tb, _round_up(pl.cdiv(b_min, 2), 128))
    b_pad = _round_up(b_min, tb)
    return tb, b_pad


# --------------------------------------------------------------------------- #
# Kernel (feature-major: activations are (features, tile_b), batch on lanes)
# --------------------------------------------------------------------------- #
def _mlp_kernel(x_ref,
                w1_ref, b1_ref,
                w2_ref, b2_ref,
                w3_ref, b3_ref,
                w4_ref, b4_ref,
                o_ref, *, precision):
    # block1: (H1, PAD_IN) @ (PAD_IN, tb) -> (H1, tb); +folded BN bias; ReLU.
    h = jnp.dot(w1_ref[...], x_ref[...],
                preferred_element_type=jnp.float32, precision=precision)
    h = jnp.maximum(h + b1_ref[...], 0.0)

    # block2: (H2, H1) @ (H1, tb) -> (H2, tb)
    h = jnp.dot(w2_ref[...], h.astype(w2_ref.dtype),
                preferred_element_type=jnp.float32, precision=precision)
    h = jnp.maximum(h + b2_ref[...], 0.0)

    # block3: (H3, H2) @ (H2, tb) -> (H3, tb)
    h = jnp.dot(w3_ref[...], h.astype(w3_ref.dtype),
                preferred_element_type=jnp.float32, precision=precision)
    h = jnp.maximum(h + b3_ref[...], 0.0)

    # output: 32 -> 1 as a sublane reduce (VPU/XLU), then tanh.  Result (1, tb)
    # is lane-dense, so the store is unmasked / dense.
    y = jnp.sum(h * w4_ref[...], axis=0, keepdims=True) + b4_ref[...]
    o_ref[...] = jnp.tanh(y).reshape(o_ref.shape)


# --------------------------------------------------------------------------- #
# Wrapper
# --------------------------------------------------------------------------- #
def improved_startle_forward(x, folded_params, *, tile_b=4096,
                             matmul_dtype=jnp.bfloat16):
    """x: [B, INPUT_SIZE] float32 -> [B, 1] float32 (eval-mode forward)."""
    B, f = x.shape
    assert f == INPUT_SIZE

    tb, b_pad = _batch_tiling(B, tile_b)
    grid_steps = b_pad // tb

    # Pad features 5 -> 8 and batch to the tile, then go feature-major so the
    # batch dimension lands on lanes inside the kernel.
    x_p = jnp.pad(x, ((0, b_pad - B), (0, PAD_IN - f)))
    xt = x_p.T.astype(matmul_dtype)                          # (PAD_IN, b_pad)

    w1t, b1, w2t, b2, w3t, b3, w4c, b4 = folded_params
    # Pre-cast matmul operands once in the wrapper (no per-step in-kernel cast
    # of VMEM-resident weights).  Biases / w4 / b4 stay f32: they feed the f32
    # accumulators and the VPU directly.
    w1t = w1t.astype(matmul_dtype)
    w2t = w2t.astype(matmul_dtype)
    w3t = w3t.astype(matmul_dtype)

    strict_f32 = jnp.dtype(matmul_dtype) == jnp.dtype(jnp.float32)
    precision = (jax.lax.Precision.HIGHEST if strict_f32
                 else jax.lax.Precision.DEFAULT)

    in_item = jnp.dtype(matmul_dtype).itemsize
    flops_per_row = 2 * (PAD_IN * H1 + H1 * H2 + H2 * H3 + H3 * OUT)
    weight_bytes = (in_item * (H1 * PAD_IN + H2 * H1 + H3 * H2)
                    + 4 * (H1 + H2 + H3 + H3 + 1))
    cost = pl.CostEstimate(
        flops=flops_per_row * b_pad,
        transcendentals=b_pad,                               # one tanh per row
        bytes_accessed=b_pad * PAD_IN * in_item + b_pad * OUT * 4 + weight_bytes,
    )

    kernel = functools.partial(_mlp_kernel, precision=precision)

    # Deeper input pipelining (only applied where it can actually be used).
    x_spec_kwargs = {}
    if grid_steps >= 3:
        x_spec_kwargs["pipeline_mode"] = pl.Buffered(3)

    out = pl.pallas_call(
        kernel,
        out_shape=jax.ShapeDtypeStruct((grid_steps, 1, tb), jnp.float32),
        grid=(grid_steps,),
        in_specs=[
            pl.BlockSpec((PAD_IN, tb), lambda i: (0, i), **x_spec_kwargs),
            pl.BlockSpec((H1, PAD_IN), lambda i: (0, 0)),    # weights: resident
            pl.BlockSpec((H1, 1), lambda i: (0, 0)),
            pl.BlockSpec((H2, H1), lambda i: (0, 0)),
            pl.BlockSpec((H2, 1), lambda i: (0, 0)),
            pl.BlockSpec((H3, H2), lambda i: (0, 0)),
            pl.BlockSpec((H3, 1), lambda i: (0, 0)),
            pl.BlockSpec((H3, 1), lambda i: (0, 0)),         # w4 as a column
            pl.BlockSpec((1, 1), lambda i: (0, 0)),          # b4 scalar
        ],
        out_specs=pl.BlockSpec((1, 1, tb), lambda i: (i, 0, 0)),
        compiler_params=pltpu.CompilerParams(
            dimension_semantics=("parallel",),
            vmem_limit_bytes=32 * 1024 * 1024,   # fits every gen incl. v7x
        ),
        cost_estimate=cost,
    )(xt, w1t, b1, w2t, b2, w3t, b3, w4c, b4)

    return out.reshape(b_pad, OUT)[:B]


# --------------------------------------------------------------------------- #
# Parameters (PyTorch-style init, deterministic BN running stats)
# --------------------------------------------------------------------------- #
def _linear_init(key, fan_in, fan_out):
    """PyTorch default Linear init: U(-1/sqrt(fan_in), ...); W stored [in, out]."""
    kw, kb = jax.random.split(key)
    bound = 1.0 / jnp.sqrt(jnp.float32(fan_in))
    w = jax.random.uniform(kw, (fan_in, fan_out), jnp.float32, -bound, bound)
    b = jax.random.uniform(kb, (1, fan_out), jnp.float32, -bound, bound)
    return w, b


def _bn_params(key, num_features):
    kg, kb, km, kv = jax.random.split(key, 4)
    gamma = 1.0 + 0.1 * jax.random.normal(kg, (1, num_features), jnp.float32)
    beta = 0.1 * jax.random.normal(kb, (1, num_features), jnp.float32)
    running_mean = 0.05 * jax.random.normal(km, (1, num_features), jnp.float32)
    running_var = 1.0 + 0.1 * jax.random.uniform(kv, (1, num_features), jnp.float32)
    return gamma, beta, running_mean, running_var


def make_raw_params(seed=0):
    key = jax.random.PRNGKey(seed)
    k = jax.random.split(key, 7)
    return (_linear_init(k[0], INPUT_SIZE, H1), _bn_params(k[1], H1),
            _linear_init(k[2], H1, H2),        _bn_params(k[3], H2),
            _linear_init(k[4], H2, H3),        _bn_params(k[5], H3),
            _linear_init(k[6], H3, OUT))


def fold_params(raw):
    """Fold eval-mode BN into the Linear layers; emit feature-major tensors."""
    (w1, b1), bn1, (w2, b2), bn2, (w3, b3), bn3, (w4, b4) = raw

    def fold(w, b, bn):
        g, be, m, v = bn
        scale = g / jnp.sqrt(v + BN_EPS)              # (1, N)
        shift = be - m * scale
        return w * scale, b * scale + shift

    w1f, b1f = fold(w1, b1, bn1)
    w2f, b2f = fold(w2, b2, bn2)
    w3f, b3f = fold(w3, b3, bn3)
    w1f = jnp.pad(w1f, ((0, PAD_IN - w1f.shape[0]), (0, 0)))   # zero rows for padded feats
    # Feature-major layout: weights (out, in), biases (out, 1).
    return (w1f.T, b1f.reshape(H1, 1),
            w2f.T, b2f.reshape(H2, 1),
            w3f.T, b3f.reshape(H3, 1),
            w4.reshape(H3, 1), b4.reshape(1, 1))


# --------------------------------------------------------------------------- #
# Pure-JAX reference (un-folded params, eval-mode BN, identity dropout)
# --------------------------------------------------------------------------- #
def reference_forward(x, raw):
    (w1, b1), bn1, (w2, b2), bn2, (w3, b3), bn3, (w4, b4) = raw

    def block(h, w, b, bn):
        g, be, m, v = bn
        h = jnp.dot(h, w, precision=jax.lax.Precision.HIGHEST) + b
        h = (h - m) / jnp.sqrt(v + BN_EPS) * g + be
        return jnp.maximum(h, 0.0)

    h = block(x, w1, b1, bn1)
    h = block(h, w2, b2, bn2)
    h = block(h, w3, b3, bn3)
    return jnp.tanh(jnp.dot(h, w4, precision=jax.lax.Precision.HIGHEST) + b4)


# --------------------------------------------------------------------------- #
if __name__ == "__main__":
    raw = make_raw_params(seed=0)
    params = fold_params(raw)

    key = jax.random.PRNGKey(0)
    k1, k2 = jax.random.split(key)

    # Small batch, not a tile multiple -> exercises padding + a 2-step grid.
    B = 300
    x = jax.random.normal(k1, (B, INPUT_SIZE), jnp.float32)
    ref = reference_forward(x, raw)

    # Strict f32 path (Precision.HIGHEST matmuls) for exact-ish parity.
    fwd_f32 = jax.jit(functools.partial(improved_startle_forward,
                                        matmul_dtype=jnp.float32))
    out_f32 = jax.block_until_ready(fwd_f32(x, params))
    assert out_f32.shape == (B, 1)
    err_f32 = float(jnp.max(jnp.abs(out_f32 - ref)))
    assert err_f32 < 1e-4, err_f32

    # Default fast path: bf16 MXU operands on every layer, f32 accumulation.
    fwd_fast = jax.jit(improved_startle_forward)
    out_fast = jax.block_until_ready(fwd_fast(x, params))
    err_fast = float(jnp.max(jnp.abs(out_fast - ref)))
    assert err_fast < 5e-2, err_fast

    # Longer (8-step) grid exercises the Buffered(3) input pipeline.
    B2 = 900
    x2 = jax.random.normal(k2, (B2, INPUT_SIZE), jnp.float32)
    ref2 = reference_forward(x2, raw)
    fwd_small_tile = jax.jit(functools.partial(improved_startle_forward,
                                               tile_b=128))
    out2 = jax.block_until_ready(fwd_small_tile(x2, params))
    assert out2.shape == (B2, 1)
    err2 = float(jnp.max(jnp.abs(out2 - ref2)))
    assert err2 < 5e-2, err2

    print("KERNEL_OK")
</pallas_src>

<mosaic_0001>
module attributes {stable_mosaic.version = 11 : i64} {
  func.func @_mlp_kernel(%arg0: i32, %arg1: memref<8x256xf32, #tpu.memory_space<vmem>>, %arg2: memref<128x8xf32, #tpu.memory_space<vmem>>, %arg3: memref<128x1xf32, #tpu.memory_space<vmem>>, %arg4: memref<64x128xf32, #tpu.memory_space<vmem>>, %arg5: memref<64x1xf32, #tpu.memory_space<vmem>>, %arg6: memref<32x64xf32, #tpu.memory_space<vmem>>, %arg7: memref<32x1xf32, #tpu.memory_space<vmem>>, %arg8: memref<32x1xf32, #tpu.memory_space<vmem>>, %arg9: memref<1x1xf32, #tpu.memory_space<vmem>>, %arg10: memref<1x1x256xf32, #tpu.memory_space<vmem>>) attributes {dimension_semantics = [#tpu.dimension_semantics<parallel>], iteration_bounds = array<i64: 2>, scalar_prefetch = 0 : i64, scratch_operands = 0 : i64, tpu.core_type = #tpu.core_type<tc>, window_params = [{transform_indices = @transform_0, window_bounds = array<i64: 8, 256>}, {pipeline_mode = #tpu.pipeline_mode<synchronous>, transform_indices = @transform_1, window_bounds = array<i64: 128, 8>}, {pipeline_mode = #tpu.pipeline_mode<synchronous>, transform_indices = @transform_2, window_bounds = array<i64: 128, 1>}, {pipeline_mode = #tpu.pipeline_mode<synchronous>, transform_indices = @transform_3, window_bounds = array<i64: 64, 128>}, {pipeline_mode = #tpu.pipeline_mode<synchronous>, transform_indices = @transform_4, window_bounds = array<i64: 64, 1>}, {pipeline_mode = #tpu.pipeline_mode<synchronous>, transform_indices = @transform_5, window_bounds = array<i64: 32, 64>}, {pipeline_mode = #tpu.pipeline_mode<synchronous>, transform_indices = @transform_6, window_bounds = array<i64: 32, 1>}, {pipeline_mode = #tpu.pipeline_mode<synchronous>, transform_indices = @transform_7, window_bounds = array<i64: 32, 1>}, {pipeline_mode = #tpu.pipeline_mode<synchronous>, transform_indices = @transform_8, window_bounds = array<i64: 1, 1>}, {transform_indices = @transform_9, window_bounds = array<i64: 1, 1, 256>}]} {
    %c0 = arith.constant 0 : index
    %c0_0 = arith.constant 0 : index
    %0 = vector.load %arg2[%c0, %c0_0] : memref<128x8xf32, #tpu.memory_space<vmem>>, vector<128x8xf32>
    %c0_1 = arith.constant 0 : index
    %c0_2 = arith.constant 0 : index
    %1 = vector.load %arg1[%c0_1, %c0_2] : memref<8x256xf32, #tpu.memory_space<vmem>>, vector<8x256xf32>
    %cst = arith.constant dense<0.000000e+00> : vector<128x256xf32>
    %2 = tpu.matmul %0, %1, %cst {dimension_numbers = #tpu.dot_dimension_numbers<[1], [0], [0], [1], [0, 0, 1, 1], [], []>, precision = #tpu.contract_precision<fp32>} : vector<128x8xf32>, vector<8x256xf32>, vector<128x256xf32> -> vector<128x256xf32>
    %c0_3 = arith.constant 0 : index
    %c0_4 = arith.constant 0 : index
    %3 = vector.load %arg3[%c0_3, %c0_4] : memref<128x1xf32, #tpu.memory_space<vmem>>, vector<128x1xf32>
    %4 = vector.broadcast %3 : vector<128x1xf32> to vector<128x256xf32>
    %5 = arith.addf %2, %4 : vector<128x256xf32>
    %cst_5 = arith.constant 0.000000e+00 : f32
    %6 = vector.broadcast %cst_5 : f32 to vector<128x256xf32>
    %7 = arith.maximumf %5, %6 : vector<128x256xf32>
    %c0_6 = arith.constant 0 : index
    %c0_7 = arith.constant 0 : index
    %8 = vector.load %arg4[%c0_6, %c0_7] : memref<64x128xf32, #tpu.memory_space<vmem>>, vector<64x128xf32>
    %cst_8 = arith.constant dense<0.000000e+00> : vector<64x256xf32>
    %9 = tpu.matmul %8, %7, %cst_8 {dimension_numbers = #tpu.dot_dimension_numbers<[1], [0], [0], [1], [0, 0, 1, 1], [], []>, precision = #tpu.contract_precision<fp32>} : vector<64x128xf32>, vector<128x256xf32>, vector<64x256xf32> -> vector<64x256xf32>
    %c0_9 = arith.constant 0 : index
    %c0_10 = arith.constant 0 : index
    %10 = vector.load %arg5[%c0_9, %c0_10] : memref<64x1xf32, #tpu.memory_space<vmem>>, vector<64x1xf32>
    %11 = vector.broadcast %10 : vector<64x1xf32> to vector<64x256xf32>
    %12 = arith.addf %9, %11 : vector<64x256xf32>
    %cst_11 = arith.constant 0.000000e+00 : f32
    %13 = vector.broadcast %cst_11 : f32 to vector<64x256xf32>
    %14 = arith.maximumf %12, %13 : vector<64x256xf32>
    %c0_12 = arith.constant 0 : index
    %c0_13 = arith.constant 0 : index
    %15 = vector.load %arg6[%c0_12, %c0_13] : memref<32x64xf32, #tpu.memory_space<vmem>>, vector<32x64xf32>
    %cst_14 = arith.constant dense<0.000000e+00> : vector<32x256xf32>
    %16 = tpu.matmul %15, %14, %cst_14 {dimension_numbers = #tpu.dot_dimension_numbers<[1], [0], [0], [1], [0, 0, 1, 1], [], []>, precision = #tpu.contract_precision<fp32>} : vector<32x64xf32>, vector<64x256xf32>, vector<32x256xf32> -> vector<32x256xf32>
    %c0_15 = arith.constant 0 : index
    %c0_16 = arith.constant 0 : index
    %17 = vector.load %arg7[%c0_15, %c0_16] : memref<32x1xf32, #tpu.memory_space<vmem>>, vector<32x1xf32>
    %18 = vector.broadcast %17 : vector<32x1xf32> to vector<32x256xf32>
    %19 = arith.addf %16, %18 : vector<32x256xf32>
    %cst_17 = arith.constant 0.000000e+00 : f32
    %20 = vector.broadcast %cst_17 : f32 to vector<32x256xf32>
    %21 = arith.maximumf %19, %20 : vector<32x256xf32>
    %c0_18 = arith.constant 0 : index
    %c0_19 = arith.constant 0 : index
    %22 = vector.load %arg8[%c0_18, %c0_19] : memref<32x1xf32, #tpu.memory_space<vmem>>, vector<32x1xf32>
    %23 = vector.broadcast %22 : vector<32x1xf32> to vector<32x256xf32>
    %24 = arith.mulf %21, %23 : vector<32x256xf32>
    %cst_20 = arith.constant dense<0.000000e+00> : vector<256xf32>
    %25 = vector.multi_reduction <add>, %24, %cst_20 [0] : vector<32x256xf32> to vector<256xf32>
    %26 = vector.shape_cast %25 : vector<256xf32> to vector<1x256xf32>
    %c0_21 = arith.constant 0 : index
    %c0_22 = arith.constant 0 : index
    %27 = vector.load %arg9[%c0_21, %c0_22] : memref<1x1xf32, #tpu.memory_space<vmem>>, vector<1x1xf32>
    %28 = vector.broadcast %27 : vector<1x1xf32> to vector<1x256xf32>
    %29 = arith.addf %26, %28 : vector<1x256xf32>
    %30 = math.tanh %29 : vector<1x256xf32>
    %31 = vector.shape_cast %30 : vector<1x256xf32> to vector<1x1x256xf32>
    %c0_23 = arith.constant 0 : index
    %c0_24 = arith.constant 0 : index
    %c0_25 = arith.constant 0 : index
    %32 = vector.load %arg10[%c0_23, %c0_24, %c0_25] : memref<1x1x256xf32, #tpu.memory_space<vmem>>, vector<1x1x256xf32>
    tpu.vector_store %arg10[%c0_23, %c0_24, %c0_25], %31 {strides = array<i32>} : memref<1x1x256xf32, #tpu.memory_space<vmem>>, vector<1x1x256xf32>,
    return
  }
  func.func @transform_0(%arg0: i32) -> (i32, i32) {
    %c0_i32 = arith.constant 0 : i32
    %c0_i32_0 = arith.constant 0 : i32
    return %c0_i32, %arg0 : i32, i32
  }
  func.func @transform_1(%arg0: i32) -> (i32, i32) {
    %c0_i32 = arith.constant 0 : i32
    %c0_i32_0 = arith.constant 0 : i32
    %c0_i32_1 = arith.constant 0 : i32
    return %c0_i32, %c0_i32_0 : i32, i32
  }
  func.func @transform_2(%arg0: i32) -> (i32, i32) {
    %c0_i32 = arith.constant 0 : i32
    %c0_i32_0 = arith.constant 0 : i32
    %c0_i32_1 = arith.constant 0 : i32
    return %c0_i32, %c0_i32_0 : i32, i32
  }
  func.func @transform_3(%arg0: i32) -> (i32, i32) {
    %c0_i32 = arith.constant 0 : i32
    %c0_i32_0 = arith.constant 0 : i32
    %c0_i32_1 = arith.constant 0 : i32
    return %c0_i32, %c0_i32_0 : i32, i32
  }
  func.func @transform_4(%arg0: i32) -> (i32, i32) {
    %c0_i32 = arith.constant 0 : i32
    %c0_i32_0 = arith.constant 0 : i32
    %c0_i32_1 = arith.constant 0 : i32
    return %c0_i32, %c0_i32_0 : i32, i32
  }
  func.func @transform_5(%arg0: i32) -> (i32, i32) {
    %c0_i32 = arith.constant 0 : i32
    %c0_i32_0 = arith.constant 0 : i32
    %c0_i32_1 = arith.constant 0 : i32
    return %c0_i32, %c0_i32_0 : i32, i32
  }
  func.func @transform_6(%arg0: i32) -> (i32, i32) {
    %c0_i32 = arith.constant 0 : i32
    %c0_i32_0 = arith.constant 0 : i32
    %c0_i32_1 = arith.constant 0 : i32
    return %c0_i32, %c0_i32_0 : i32, i32
  }
  func.func @transform_7(%arg0: i32) -> (i32, i32) {
    %c0_i32 = arith.constant 0 : i32
    %c0_i32_0 = arith.constant 0 : i32
    %c0_i32_1 = arith.constant 0 : i32
    return %c0_i32, %c0_i32_0 : i32, i32
  }
  func.func @transform_8(%arg0: i32) -> (i32, i32) {
    %c0_i32 = arith.constant 0 : i32
    %c0_i32_0 = arith.constant 0 : i32
    %c0_i32_1 = arith.constant 0 : i32
    return %c0_i32, %c0_i32_0 : i32, i32
  }
  func.func @transform_9(%arg0: i32) -> (i32, i32, i32) {
    %c0_i32 = arith.constant 0 : i32
    %c0_i32_0 = arith.constant 0 : i32
    %c0_i32_1 = arith.constant 0 : i32
    return %arg0, %c0_i32, %c0_i32_0 : i32, i32, i32
  }
}

</mosaic_0001>

<bundles_post_ra>
// kernel: improved_startle_forward.1
= control target key start
LH: loop header
LB: loop body
LE: loop exit
PB: predicated region body
PF: predicated region fallthrough
CT: control target
= control target key end

     0   :  { %s4700_s11 = smov 0   ;;  %s6362_s0 = inlined_call_operand.vmem [shape: f32[8,512], index: 0, kind: input, shape index: {}]   ;;  %s6363_s1 = inlined_call_operand.vmem [shape: f32[128,8], index: 1, kind: input, shape index: {}]   ;;  %s6364_s2 = inlined_call_operand.vmem [shape: f32[128,1], index: 2, kind: input, shape index: {}]   ;;  %s6365_s3 = inlined_call_operand.vmem [shape: f32[64,128], index: 3, kind: input, shape index: {}]   ;;  %s6366_s4 = inlined_call_operand.vmem [shape: f32[64,1], index: 4, kind: input, shape index: {}]   ;;  %s6367_s5 = inlined_call_operand.vmem [shape: f32[32,64], index: 5, kind: input, shape index: {}]   ;;  %s6368_s6 = inlined_call_operand.vmem [shape: f32[32,1], index: 6, kind: input, shape index: {}]   ;;  %s6369_s7 = inlined_call_operand.vmem [shape: f32[32,1], index: 7, kind: input, shape index: {}]   ;;  %s6370_s8 = inlined_call_operand.<no memory space> [shape: f32[1,1], index: 8, kind: input, shape index: {}]   ;;  %s6371_s9 = inlined_call_operand.vmem [shape: f32[2,1,256], index: 9, kind: output, shape index: {}]  }
   0x1   :  { %v14_v0 = vstv %s6370_s8 }
   0x2   :  { %15 = vst [vmem:[#allocation2] sm:$0x1] %v14_v0 }
   0x3 LB: > { %s4706_s12 = sadd.s32 4294967295, %s4642_s11   ;;  %p3987_p0 = scmp.ge.s32.totalorder %s4642_s11, 1  ;;  %s4642_s11 = sphi %s4700_s11, %s21_s11  }
   0x4   : > { %p290_p1 = scmp.lt.s32.totalorder %s4642_s11, 3 }
   0x6   : > { %p291_p2 = pnand %p3987_p0, %p290_p1 }
   0x8   : > { %294 = sbr.rel (%p291_p2) target bundleno = 1350 (0x546), region = 56 }
   0xf   : > { %s3988_s13 = sshll.u32 %s4706_s12, 1  ;;  %v335_v1 = vld [vmem:[%s6363_s1] sm:$0xff]  ;;  %vm449_vm0 = vcmask 64512   ;;  %v336_v2 = vld [vmem:[%s6363_s1 + $0x8] sm:$0xff]  ;;  %v337_v3 = vld [vmem:[%s6363_s1 + $0x10] sm:$0xff]  ;;  %v6376_v4 = vmov 0.0  }
  0x10   : > { %p326_p3 = scmp.lt.s32.totalorder %s3988_s13, 3  ;;  %564 = vmatprep.mubr.f32.mxu0 %v6376_v4  ;;  %v451_v5 = vsel %vm449_vm0, %v335_v1, 0  ;;  %v454_v6 = vsel %vm449_vm0, %v336_v2, 0  ;;  %v457_v7 = vsel %vm449_vm0, %v337_v3, 0  ;;  %v338_v8 = vld [vmem:[%s6363_s1 + $0x18] sm:$0xff]  ;;  %608 = vmatprep.mubr.f32.mxu1 %v6376_v4  ;;  %v339_v42 = vld [vmem:[%s6363_s1 + $0x20] sm:$0xff] }
  0x11   : > { %v4728_v9 = vand.u32 4294901760, %v451_v5  ;;  %v4730_v10 = vand.u32 4294901760, %v454_v6  ;;  %v4732_v11 = vand.u32 4294901760, %v457_v7  ;;  %v460_v12 = vsel %vm449_vm0, %v338_v8, 0  ;;  %v340_v44 = vld [vmem:[%s6363_s1 + $0x28] sm:$0xff]  ;;  %v341_v47 = vld [vmem:[%s6363_s1 + $0x30] sm:$0xff] }
  0x12   : > { %s6619_s13 = smov (!%p326_p3, %s3988_s13), 3  ;;  %v4735_v13 = vand.u32 4294901760, %v460_v12  ;;  %v4807_v43 = vsel %vm449_vm0, %v339_v42, 0  ;;  %v4818_v46 = vsel %vm449_vm0, %v340_v44, 0  ;;  %v4829_v49 = vsel %vm449_vm0, %v341_v47, 0  ;;  %v342_v50 = vld [vmem:[%s6363_s1 + $0x38] sm:$0xff] }
  0x13   : > { %v4738_v14 = vsub.f32 %v451_v5, %v4728_v9  ;;  %v4741_v15 = vsub.f32 %v454_v6, %v4730_v10  ;;  %v4744_v16 = vsub.f32 %v457_v7, %v4732_v11  ;;  %s3989_s21 = sshll.u32 %s6619_s13, 3  ;;  %v4814_v45 = vand.u32 4294901760, %v4807_v43  ;;  %v343_v53 = vld [vmem:[%s6363_s1 + $0x40] sm:$0xff]  ;;  %v344_v56 = vld [vmem:[%s6363_s1 + $0x48] sm:$0xff]  ;;  %v345_v59 = vld [vmem:[%s6363_s1 + $0x50] sm:$0xff]  ;;  %p331_p4 = scmp.lt.s32.totalorder %s4706_s12, 1 }
  0x14   : > { %s329_s24 = scalar_lea.vmem %s6362_s0, %s3989_s21  ;;  %v4753_v22 = vsub.f32 %v460_v12, %v4735_v13  ;;  %v4825_v48 = vand.u32 4294901760, %v4818_v46  ;;  %v4836_v51 = vand.u32 4294901760, %v4829_v49  ;;  %v4840_v52 = vsel %vm449_vm0, %v342_v50, 0  ;;  %v346_v62 = vld [vmem:[%s6363_s1 + $0x58] sm:$0xff]  ;;  %v347_v1 = vld [vmem:[%s6363_s1 + $0x60] sm:$0xff]  ;;  %v348_v5 = vld [vmem:[%s6363_s1 + $0x68] sm:$0xff] }
  0x15   : > { %v567_v17 = vand.u32 4294901760, %v4738_v14  ;;  %v578_v18 = vand.u32 4294901760, %v4741_v15  ;;  %v352_v19 = vld [vmem:[%s329_s24 + $0x8] sm:$0xff]  ;;  %v351_v20 = vld [vmem:[%s329_s24] sm:$0xff]  ;;  %v589_v21 = vand.u32 4294901760, %v4744_v16  ;;  %v4847_v54 = vand.u32 4294901760, %v4840_v52 }
  0x16   : > { %v4755_v23 = vand.u32 4294901760, %v352_v19  ;;  %v4757_v24 = vand.u32 4294901760, %v351_v20  ;;  %v600_v30 = vand.u32 4294901760, %v4753_v22  ;;  %v475_v55 = vsel %vm449_vm0, %v343_v53, 0  ;;  %v349_v8 = vld [vmem:[%s6363_s1 + $0x70] sm:$0xff]  ;;  %s6621_s12 = smov (!%p331_p4, %s4706_s12), 1 }
  0x17   : > { %v568_v25 = vsub.f32 %v4738_v14, %v567_v17  ;;  %v579_v26 = vsub.f32 %v4741_v15, %v578_v18  ;;  %v590_v34 = vsub.f32 %v4744_v16, %v589_v21  ;;  %v4855_v57 = vand.u32 4294901760, %v475_v55  ;;  %s3990_s17 = sshll.u32 %s6621_s12, 1 }
  0x18   : > { %499 = vmatprep.subr.mxu0 %v4755_v23  ;;  %v4767_v28 = vsub.f32 %v352_v19, %v4755_v23  ;;  %v4770_v29 = vsub.f32 %v351_v20, %v4757_v24  ;;  %4281 = vmatprep.subr.mxu1 %v4755_v23  ;;  %v601_v40 = vsub.f32 %v4753_v22, %v600_v30  ;;  %v478_v58 = vsel %vm449_vm0, %v344_v56, 0  ;;  %v350_v20 = vld [vmem:[%s6363_s1 + $0x78] sm:$0xff]  ;;  %s334_s20 = scalar_lea.vmem %s6371_s9, %s3990_s17 }
  0x19   : > { %v569_v27 = vand.u32 4294901760, %v568_v25  ;;  %501 = vmatpush1.msra.mxu0 %v4757_v24  ;;  %4282 = vmatpush1.msra.mxu1 %v4757_v24  ;;  %v580_v31 = vand.u32 4294901760, %v579_v26  ;;  %v591_v39 = vand.u32 4294901760, %v590_v34  ;;  %v4863_v60 = vand.u32 4294901760, %v478_v58 }
  0x1a   : > { %v743_v32 = vand.u32 4294901760, %v4767_v28  ;;  %v749_v33 = vand.u32 4294901760, %v4770_v29  ;;  %v602_v41 = vand.u32 4294901760, %v601_v40  ;;  %v481_v61 = vsel %vm449_vm0, %v345_v59, 0 }
  0x1b   : > { %570 = vmatmul.mubr.f32.vlgmr.msra.gmra.mrb[0].mxu0 %v569_v27  ;;  %v4871_v63 = vand.u32 4294901760, %v481_v61  ;;  %v484_v0 = vsel %vm449_vm0, %v346_v62, 0  ;;  %v487_v3 = vsel %vm449_vm0, %v347_v1, 0  ;;  %v490_v7 = vsel %vm449_vm0, %v348_v5, 0 }
  0x1c   : > { %575 = vmatprep.mubr.f32.mxu0 %v6376_v4  ;;  %v744_v35 = vsub.f32 %v4767_v28, %v743_v32  ;;  %v750_v36 = vsub.f32 %v4770_v29, %v749_v33  ;;  %v4879_v2 = vand.u32 4294901760, %v484_v0  ;;  %v4887_v6 = vand.u32 4294901760, %v487_v3 }
  0x1d   : > { %v4895_v12 = vand.u32 4294901760, %v490_v7  ;;  %v4899_v19 = vsel %vm449_vm0, %v349_v8, 0  ;;  %v4910_v26 = vsel %vm449_vm0, %v350_v20, 0  ;;  %v4949_v34 = vsub.f32 %v4840_v52, %v4847_v54 }
  0x1e   : > { %v745_v37 = vand.u32 4294901760, %v744_v35  ;;  %v751_v38 = vand.u32 4294901760, %v750_v36  ;;  %v4906_v25 = vand.u32 4294901760, %v4899_v19  ;;  %v4914_v27 = vand.u32 4294901760, %v4910_v26 }
  0x1f   : > { %581 = vmatmul.mubr.f32.gmra.mrb[2].mxu0 %v580_v31  ;;  %v4931_v31 = vsub.f32 %v4807_v43, %v4814_v45  ;;  %v4954_v35 = vsub.f32 %v475_v55, %v4855_v57  ;;  %v4959_v36 = vsub.f32 %v478_v58, %v4863_v60  ;;  %v4979_v43 = vsub.f32 %v487_v3, %v4887_v6 }
  0x20   : > { %586 = vmatprep.mubr.f32.mxu0 %v6376_v4  ;;  %746 = vmatprep.subr.mxu0 %v745_v37  ;;  %v4964_v37 = vsub.f32 %v481_v61, %v4871_v63  ;;  %v644_v52 = vand.u32 4294901760, %v4949_v34  ;;  %v5000_v55 = vsub.f32 %v4899_v19, %v4906_v25  ;;  %v5011_v61 = vsub.f32 %v4910_v26, %v4914_v27 }
  0x21   : > { %752 = vmatpush1.msra.mxu0 %v751_v38  ;;  %v611_v38 = vand.u32 4294901760, %v4931_v31  ;;  %v655_v58 = vand.u32 4294901760, %v4954_v35  ;;  %vm3028_vm1 = vcmask 523264  }
  0x22   : > { %930 = vmatprep.subr.mxu0 %v4767_v28  ;;  %v4937_v28 = vsub.f32 %v4818_v46, %v4825_v48  ;;  %v645_v56 = vsub.f32 %v4949_v34, %v644_v52  ;;  %v677_v5 = vand.u32 4294901760, %v4964_v37 }
  0x23   : > { %592 = vmatmul.mubr.f32.gmra.mrb[4].mxu0 %v591_v39  ;;  %v4970_v39 = vsub.f32 %v484_v0, %v4879_v2  ;;  %v612_v40 = vsub.f32 %v4931_v31, %v611_v38  ;;  %v656_v62 = vsub.f32 %v4954_v35, %v655_v58  ;;  %v666_v0 = vand.u32 4294901760, %v4959_v36 }
  0x24   : > { %597 = vmatprep.mubr.f32.mxu0 %v6376_v4  ;;  %v646_v59 = vand.u32 4294901760, %v645_v56  ;;  %v678_v8 = vsub.f32 %v4964_v37, %v677_v5  ;;  %v1739_v56 = vld [vmem:[%s6366_s4 + $0x8] sm:$0xff] }
  0x25   : > { %v613_v42 = vand.u32 4294901760, %v612_v40  ;;  %v657_v1 = vand.u32 4294901760, %v656_v62  ;;  %v667_v3 = vsub.f32 %v4959_v36, %v666_v0  ;;  %v688_v19 = vand.u32 4294901760, %v4970_v39  ;;  %v361_v40 = vld [vmem:[%s6364_s2 + $0x40] sm:$0xff]  ;;  %v1743_v62 = vld [vmem:[%s6366_s4 + $0x28] sm:$0xff] }
  0x26   : > { %v679_v20 = vand.u32 4294901760, %v678_v8  ;;  %v3007_v8 = vld [vmem:[%s6368_s6 + $0x18] sm:$0xff] }
  0x27   : > { %603 = vmatmul.mubr.f32.gmra.mrb[6].mxu0 %v602_v41  ;;  %v622_v41 = vand.u32 4294901760, %v4937_v28  ;;  %614 = vmatmul.mubr.f32.vlgmr.msra.gmra.mrb[0].mxu1 %v613_v42  ;;  %v363_v42 = vld [vmem:[%s6364_s2 + $0x50] sm:$0xff] }
  0x28   : > { %815 = vmatprep.mubr.f32.mxu0 %v6376_v4  ;;  %619 = vmatprep.mubr.f32.mxu1 %v6376_v4 }
  0x29   : > { %v623_v44 = vsub.f32 %v4937_v28, %v622_v41 }
  0x2b   : > { %817 = vmatmul.mubr.f32.vlgmr.msra.gmra.mrb[0].mxu0 %v4728_v9  ;;  %v624_v47 = vand.u32 4294901760, %v623_v44  ;;  %v365_v44 = vld [vmem:[%s6364_s2 + $0x60] sm:$0xff] }
  0x2c   : > { %822 = vmatprep.mubr.f32.mxu0 %v6376_v4  ;;  %933 = vmatpush1.msra.mxu0 %v4770_v29 }
  0x2d   : > { %1126 = vmatprep.subr.mxu0 %v4755_v23  ;;  %625 = vmatmul.mubr.f32.gmra.mrb[2].mxu1 %v624_v47  ;;  %v367_v47 = vld [vmem:[%s6364_s2 + $0x70] sm:$0xff] }
  0x2e   : > { %630 = vmatprep.mubr.f32.mxu1 %v6376_v4 }
  0x2f   : > { %824 = vmatmul.mubr.f32.gmra.mrb[2].mxu0 %v4730_v10 }
  0x30   : > { %829 = vmatprep.mubr.f32.mxu0 %v6376_v4 }
  0x33   : > { %831 = vmatmul.mubr.f32.gmra.mrb[4].mxu0 %v4732_v11 }
  0x34   : > { %836 = vmatprep.mubr.f32.mxu0 %v6376_v4 }
  0x37   : > { %838 = vmatmul.mubr.f32.gmra.mrb[6].mxu0 %v4735_v13 }
  0x38   : > { %843 = vmatprep.mubr.f32.mxu0 %v6376_v4 }
  0x3b   : > { %845 = vmatmul.mubr.f32.gmra.mrb[8].mxu0 %v4814_v45 }
  0x3c   : > { %850 = vmatprep.mubr.f32.mxu0 %v6376_v4 }
  0x3f   : > { %852 = vmatmul.mubr.f32.gmra.mrb[10].mxu0 %v4825_v48 }
  0x40   : > { %857 = vmatprep.mubr.f32.mxu0 %v6376_v4 }
  0x43   : > { %859 = vmatmul.mubr.f32.gmra.mrb[12].mxu0 %v4836_v51 }
  0x44   : > { %864 = vmatprep.mubr.f32.mxu0 %v6376_v4 }
  0x47   : > { %866 = vmatmul.mubr.f32.gmra.mrb[14].mxu0 %v4847_v54 }
  0x48   : > { %871 = vmatprep.mubr.f32.mxu0 %v6376_v4 }
  0x4b   : > { %873 = vmatmul.mubr.f32.gmra.mrb[16].mxu0 %v4855_v57 }
  0x4c   : > { %878 = vmatprep.mubr.f32.mxu0 %v6376_v4 }
  0x4f   : > { %880 = vmatmul.mubr.f32.gmra.mrb[18].mxu0 %v4863_v60 }
  0x50   : > { %885 = vmatprep.mubr.f32.mxu0 %v6376_v4 }
  0x53   : > { %887 = vmatmul.mubr.f32.gmra.mrb[20].mxu0 %v4871_v63 }
  0x54   : > { %892 = vmatprep.mubr.f32.mxu0 %v6376_v4 }
  0x57   : > { %894 = vmatmul.mubr.f32.gmra.mrb[22].mxu0 %v4879_v2 }
  0x58   : > { %899 = vmatprep.mubr.f32.mxu0 %v6376_v4 }
  0x5b   : > { %901 = vmatmul.mubr.f32.gmra.mrb[24].mxu0 %v4887_v6 }
  0x5c   : > { %906 = vmatprep.mubr.f32.mxu0 %v6376_v4 }
  0x5f   : > { %908 = vmatmul.mubr.f32.gmra.mrb[26].mxu0 %v4895_v12 }
  0x60   : > { %913 = vmatprep.mubr.f32.mxu0 %v6376_v4 }
  0x63   : > { %915 = vmatmul.mubr.f32.gmra.mrb[28].mxu0 %v4906_v25 }
  0x64   : > { %920 = vmatprep.mubr.f32.mxu0 %v6376_v4 }
  0x67   : > { %922 = vmatmul.mubr.f32.gmra.mrb[30].mxu0 %v4914_v27 }
  0x68   : > { %996 = vmatprep.mubr.f32.mxu0 %v6376_v4 }
  0x6b   : > { %999 = vmatmul.mubr.f32.vlgmr.msra.gmra.mrb[0].mxu0 %v4738_v14  ;;  %v689_v14 = vsub.f32 %v4970_v39, %v688_v19 }
  0x6c   : > { %1004 = vmatprep.mubr.f32.mxu0 %v6376_v4  ;;  %1128 = vmatpush1.msra.mxu0 %v4757_v24 }
  0x6d   : > { %1339 = vmatprep.subr.mxu0 %v743_v32  ;;  %v4943_v32 = vsub.f32 %v4829_v49, %v4836_v51  ;;  %v4989_v49 = vsub.f32 %v490_v7, %v4895_v12  ;;  %v668_v7 = vand.u32 4294901760, %v667_v3  ;;  %v690_v29 = vand.u32 4294901760, %v689_v14  ;;  %v3843_v3 = vld [vmem:[%s6369_s7] sm:$0xff]  ;;  %v3846_v14 = vld [vmem:[%s6369_s7 + $0x18] sm:$0xff] }
  0x6f   : > { %1007 = vmatmul.mubr.f32.gmra.mrb[2].mxu0 %v4741_v15  ;;  %v633_v46 = vand.u32 4294901760, %v4943_v32  ;;  %v710_v15 = vand.u32 4294901760, %v4989_v49 }
  0x70   : > { %1012 = vmatprep.mubr.f32.mxu0 %v6376_v4 }
  0x71   : > { %v634_v50 = vsub.f32 %v4943_v32, %v633_v46 }
  0x73   : > { %1015 = vmatmul.mubr.f32.gmra.mrb[4].mxu0 %v4744_v16  ;;  %v635_v53 = vand.u32 4294901760, %v634_v50  ;;  %v721_v16 = vand.u32 4294901760, %v5000_v55  ;;  %v1738_v50 = vld [vmem:[%s6366_s4] sm:$0xff] }
  0x74   : > { %1020 = vmatprep.mubr.f32.mxu0 %v6376_v4 }
  0x75   : > { %636 = vmatmul.mubr.f32.gmra.mrb[4].mxu1 %v635_v53  ;;  %v722_v26 = vsub.f32 %v5000_v55, %v721_v16  ;;  %v368_v53 = vld [vmem:[%s6364_s2 + $0x78] sm:$0xff] }
  0x76   : > { %641 = vmatprep.mubr.f32.mxu1 %v6376_v4 }
  0x77   : > { %1023 = vmatmul.mubr.f32.gmra.mrb[6].mxu0 %v4753_v22  ;;  %v723_v22 = vand.u32 4294901760, %v722_v26 }
  0x78   : > { %1028 = vmatprep.mubr.f32.mxu0 %v6376_v4 }
  0x79   : > { %647 = vmatmul.mubr.f32.gmra.mrb[6].mxu1 %v646_v59  ;;  %v1741_v59 = vld [vmem:[%s6366_s4 + $0x18] sm:$0xff] }
  0x7a   : > { %652 = vmatprep.mubr.f32.mxu1 %v6376_v4 }
  0x7b   : > { %1031 = vmatmul.mubr.f32.gmra.mrb[8].mxu0 %v4931_v31 }
  0x7c   : > { %1036 = vmatprep.mubr.f32.mxu0 %v6376_v4 }
  0x7d   : > { %658 = vmatmul.mubr.f32.gmra.mrb[8].mxu1 %v657_v1  ;;  %v1745_v1 = vld [vmem:[%s6366_s4 + $0x38] sm:$0xff] }
  0x7e   : > { %663 = vmatprep.mubr.f32.mxu1 %v6376_v4 }
  0x7f   : > { %1039 = vmatmul.mubr.f32.gmra.mrb[10].mxu0 %v4937_v28  ;;  %v353_v28 = vld [vmem:[%s6364_s2] sm:$0xff] }
  0x80   : > { %1044 = vmatprep.mubr.f32.mxu0 %v6376_v4 }
  0x81   : > { %669 = vmatmul.mubr.f32.gmra.mrb[10].mxu1 %v668_v7  ;;  %v3845_v7 = vld [vmem:[%s6369_s7 + $0x10] sm:$0xff] }
  0x82   : > { %674 = vmatprep.mubr.f32.mxu1 %v6376_v4 }
  0x83   : > { %1047 = vmatmul.mubr.f32.gmra.mrb[12].mxu0 %v4943_v32  ;;  %v4645_v32 = vmov 0  }
  0x84   : > { %1052 = vmatprep.mubr.f32.mxu0 %v6376_v4  ;;  %4630 = vset.pattern.permute.xlu0 %v4645_v32 }
  0x85   : > { %680 = vmatmul.mubr.f32.gmra.mrb[12].mxu1 %v679_v20  ;;  %371 = vperm.xlu0 %4630, %v353_v28   ;;  %v3844_v20 = vld [vmem:[%s6369_s7 + $0x8] sm:$0xff] }
  0x86   : > { %685 = vmatprep.mubr.f32.mxu1 %v6376_v4  ;;  %4631 = vset.pattern.permute.xlu1 %v4645_v32 }
  0x87   : > { %1055 = vmatmul.mubr.f32.gmra.mrb[14].mxu0 %v4949_v34  ;;  %v354_v34 = vld [vmem:[%s6364_s2 + $0x8] sm:$0xff] }
  0x88   : > { %1060 = vmatprep.mubr.f32.mxu0 %v6376_v4 }
  0x89   : > { %691 = vmatmul.mubr.f32.gmra.mrb[14].mxu1 %v690_v29  ;;  %376 = vperm.xlu0 %4630, %v354_v34  }
  0x8a   : > { %696 = vmatprep.mubr.f32.mxu1 %v6376_v4 }
  0x8b   : > { %1063 = vmatmul.mubr.f32.gmra.mrb[16].mxu0 %v4954_v35  ;;  %v357_v35 = vld [vmem:[%s6364_s2 + $0x20] sm:$0xff] }
  0x8c   : > { %1068 = vmatprep.mubr.f32.mxu0 %v6376_v4 }
  0x8d   : > { %391 = vperm.xlu0 %4630, %v357_v35  }
  0x8f   : > { %1071 = vmatmul.mubr.f32.gmra.mrb[18].mxu0 %v4959_v36 }
  0x90   : > { %1076 = vmatprep.mubr.f32.mxu0 %v6376_v4 }
  0x93   : > { %1079 = vmatmul.mubr.f32.gmra.mrb[20].mxu0 %v4964_v37  ;;  %v355_v37 = vld [vmem:[%s6364_s2 + $0x10] sm:$0xff] }
  0x94   : > { %1084 = vmatprep.mubr.f32.mxu0 %v6376_v4  ;;  %381 = vperm.xlu1 %4631, %v355_v37  }
  0x97   : > { %1087 = vmatmul.mubr.f32.gmra.mrb[22].mxu0 %v4970_v39  ;;  %v356_v39 = vld [vmem:[%s6364_s2 + $0x18] sm:$0xff] }
  0x98   : > { %1092 = vmatprep.mubr.f32.mxu0 %v6376_v4  ;;  %386 = vperm.xlu1 %4631, %v356_v39   ;;  %v1731_v39 = vld [vmem:[%s6365_s3 + $0x8] sm:$0xff] }
  0x9b   : > { %1095 = vmatmul.mubr.f32.gmra.mrb[24].mxu0 %v4979_v43 }
  0x9c   : > { %1100 = vmatprep.mubr.f32.mxu0 %v6376_v4 }
  0x9f   : > { %1103 = vmatmul.mubr.f32.gmra.mrb[26].mxu0 %v4989_v49 }
  0xa0   : > { %1108 = vmatprep.mubr.f32.mxu0 %v6376_v4 }
  0xa3   : > { %1111 = vmatmul.mubr.f32.gmra.mrb[28].mxu0 %v5000_v55  ;;  %v1742_v55 = vld [vmem:[%s6366_s4 + $0x20] sm:$0xff] }
  0xa4   : > { %1116 = vmatprep.mubr.f32.mxu0 %v6376_v4 }
  0xa7   : > { %1119 = vmatmul.mubr.f32.gmra.mrb[30].mxu0 %v5011_v61 }
  0xa8   : > { %1191 = vmatprep.mubr.f32.mxu0 %v6376_v4 }
  0xab   : > { %1195 = vmatmul.mubr.f32.vlgmr.msra.gmra.mrb[0].mxu0 %v567_v17  ;;  %v699_v17 = vand.u32 4294901760, %v4979_v43 }
  0xac   : > { %1200 = vmatprep.mubr.f32.mxu0 %v6376_v4  ;;  %1343 = vmatpush1.msra.mxu0 %v749_v33  ;;  %v711_v33 = vsub.f32 %v4989_v49, %v710_v15  ;;  %v364_v49 = vld [vmem:[%s6364_s2 + $0x58] sm:$0xff] }
  0xad   : > { %1520 = vmatprep.subr.mxu0 %v4755_v23  ;;  %v700_v23 = vsub.f32 %v4979_v43, %v699_v17  ;;  %v360_v43 = vld [vmem:[%s6364_s2 + $0x38] sm:$0xff] }
  0xaf   : > { %1204 = vmatmul.mubr.f32.gmra.mrb[2].mxu0 %v578_v18  ;;  %v701_v18 = vand.u32 4294901760, %v700_v23 }
  0xb0   : > { %1209 = vmatprep.mubr.f32.mxu0 %v6376_v4 }
  0xb1   : > { %702 = vmatmul.mubr.f32.gmra.mrb[16].mxu1 %v701_v18 }
  0xb2   : > { %707 = vmatprep.mubr.f32.mxu1 %v6376_v4 }
  0xb3   : > { %1213 = vmatmul.mubr.f32.gmra.mrb[4].mxu0 %v589_v21  ;;  %v712_v21 = vand.u32 4294901760, %v711_v33 }
  0xb4   : > { %1218 = vmatprep.mubr.f32.mxu0 %v6376_v4 }
  0xb5   : > { %713 = vmatmul.mubr.f32.gmra.mrb[18].mxu1 %v712_v21 }
  0xb6   : > { %718 = vmatprep.mubr.f32.mxu1 %v6376_v4 }
  0xb7   : > { %1222 = vmatmul.mubr.f32.gmra.mrb[6].mxu0 %v600_v30  ;;  %v732_v30 = vand.u32 4294901760, %v5011_v61 }
  0xb8   : > { %1227 = vmatprep.mubr.f32.mxu0 %v6376_v4 }
  0xb9   : > { %724 = vmatmul.mubr.f32.gmra.mrb[20].mxu1 %v723_v22  ;;  %v733_v31 = vsub.f32 %v5011_v61, %v732_v30  ;;  %v3004_v61 = vld [vmem:[%s6368_s6] sm:$0xff] }
  0xba   : > { %729 = vmatprep.mubr.f32.mxu1 %v6376_v4 }
  0xbb   : > { %1231 = vmatmul.mubr.f32.gmra.mrb[8].mxu0 %v611_v38  ;;  %v734_v36 = vand.u32 4294901760, %v733_v31  ;;  %v359_v38 = vld [vmem:[%s6364_s2 + $0x30] sm:$0xff] }
  0xbc   : > { %1236 = vmatprep.mubr.f32.mxu0 %v6376_v4  ;;  %401 = vperm.xlu0 %4630, %v359_v38   ;;  %v1730_v38 = vld [vmem:[%s6365_s3] sm:$0xff] }
  0xbd   : > { %735 = vmatmul.mubr.f32.gmra.mrb[22].mxu1 %v734_v36 }
  0xbe   : > { %1882 = vmatprep.mubr.f32.mxu1 %v6376_v4 }
  0xbf   : > { %1240 = vmatmul.mubr.f32.gmra.mrb[10].mxu0 %v622_v41  ;;  %v358_v41 = vld [vmem:[%s6364_s2 + $0x28] sm:$0xff] }
  0xc0   : > { %1245 = vmatprep.mubr.f32.mxu0 %v6376_v4  ;;  %411 = vperm.xlu0 %4630, %v361_v40   ;;  %v1732_v40 = vld [vmem:[%s6365_s3 + $0x10] sm:$0xff] }
  0xc1   : > { %396 = vperm.xlu1 %4631, %v358_v41  }
  0xc3   : > { %1249 = vmatmul.mubr.f32.gmra.mrb[12].mxu0 %v633_v46  ;;  %v362_v46 = vld [vmem:[%s6364_s2 + $0x48] sm:$0xff] }
  0xc4   : > { %1254 = vmatprep.mubr.f32.mxu0 %v6376_v4  ;;  %421 = vperm.xlu0 %4630, %v363_v42   ;;  %v5260_v42 = vand.u32 4294901760, %v1730_v38 }
  0xc5   : > { %406 = vperm.xlu1 %4631, %v360_v43   ;;  %v5262_v43 = vand.u32 4294901760, %v1731_v39 }
  0xc6   : > { %6460 = vst [vmem:[#allocation3_spill] sm:$0xff] %v5260_v42 }
  0xc7   : > { %1258 = vmatmul.mubr.f32.gmra.mrb[14].mxu0 %v644_v52  ;;  %v1740_v52 = vld [vmem:[%s6366_s4 + $0x10] sm:$0xff]  ;;  %6461 = vst [vmem:[#allocation4_spill] sm:$0xff] %v5262_v43 }
  0xc8   : > { %1263 = vmatprep.mubr.f32.mxu0 %v6376_v4  ;;  %431 = vperm.xlu0 %4630, %v365_v44  }
  0xc9   : > { %416 = vperm.xlu1 %4631, %v362_v46   ;;  %v5264_v46 = vand.u32 4294901760, %v1732_v40 }
  0xcb   : > { %1267 = vmatmul.mubr.f32.gmra.mrb[16].mxu0 %v655_v58  ;;  %v1744_v58 = vld [vmem:[%s6366_s4 + $0x30] sm:$0xff]  ;;  %6462 = vst [vmem:[#allocation5_spill] sm:$0xff] %v5264_v46 }
  0xcc   : > { %1272 = vmatprep.mubr.f32.mxu0 %v6376_v4  ;;  %441 = vperm.xlu0 %4630, %v367_v47   ;;  %v1733_v47 = vld [vmem:[%s6365_s3 + $0x18] sm:$0xff] }
  0xcd   : > { %426 = vperm.xlu1 %4631, %v364_v49   ;;  %v5270_v49 = vsub.f32 %v1730_v38, %v5260_v42 }
  0xcf   : > { %1276 = vmatmul.mubr.f32.gmra.mrb[18].mxu0 %v666_v0  ;;  %v3006_v0 = vld [vmem:[%s6368_s6 + $0x10] sm:$0xff]  ;;  %6463 = vst [vmem:[#allocation6_spill] sm:$0xff] %v5270_v49 }
  0xd0   : > { %1281 = vmatprep.mubr.f32.mxu0 %v6376_v4  ;;  %1748 = vperm.xlu0 %4630, %v1738_v50   ;;  %v5273_v50 = vsub.f32 %v1731_v39, %v5262_v43 }
  0xd2   : > { %6464 = vst [vmem:[#allocation7_spill] sm:$0xff] %v5273_v50 }
  0xd3   : > { %1285 = vmatmul.mubr.f32.gmra.mrb[20].mxu0 %v677_v5  ;;  %v3005_v5 = vld [vmem:[%s6368_s6 + $0x8] sm:$0xff] }
  0xd4   : > { %1290 = vmatprep.mubr.f32.mxu0 %v6376_v4  ;;  %1758 = vperm.xlu0 %4630, %v1740_v52  }
  0xd7   : > { %1294 = vmatmul.mubr.f32.gmra.mrb[22].mxu0 %v688_v19  ;;  %v3893_v19 = vld [vmem:[#allocation2] sm:$0x1] }
  0xd8   : > { %1299 = vmatprep.mubr.f32.mxu0 %v6376_v4  ;;  %1768 = vperm.xlu0 %4630, %v1742_v55   ;;  %v5280_v55 = vsub.f32 %v1732_v40, %v5264_v46 }
  0xda   : > { %6465 = vst [vmem:[#allocation8_spill] sm:$0xff] %v5280_v55 }
  0xdb   : > { %1303 = vmatmul.mubr.f32.gmra.mrb[24].mxu0 %v699_v17 }
  0xdc   : > { %1308 = vmatprep.mubr.f32.mxu0 %v6376_v4  ;;  %1778 = vperm.xlu0 %4630, %v1744_v58  }
  0xdf   : > { %1312 = vmatmul.mubr.f32.gmra.mrb[26].mxu0 %v710_v15 }
  0xe0   : > { %1317 = vmatprep.mubr.f32.mxu0 %v6376_v4  ;;  %3010 = vperm.xlu0 %4630, %v3004_v61  }
  0xe3   : > { %1321 = vmatmul.mubr.f32.gmra.mrb[28].mxu0 %v721_v16 }
  0xe4   : > { %1326 = vmatprep.mubr.f32.mxu0 %v6376_v4  ;;  %3020 = vperm.xlu0 %4630, %v3006_v0  }
  0xe7   : > { %1330 = vmatmul.mubr.f32.gmra.mrb[30].mxu0 %v732_v30 }
  0xe8   : > { %1406 = vmatprep.mubr.f32.mxu0 %v6376_v4  ;;  %3849 = vperm.xlu0 %4630, %v3843_v3  }
  0xeb   : > { %1408 = vmatmul.mubr.f32.vlgmr.msra.gmra.mrb[0].mxu0 %v4728_v9 }
  0xec   : > { %1413 = vmatprep.mubr.f32.mxu0 %v6376_v4  ;;  %1522 = vmatpush1.msra.mxu0 %v4757_v24  ;;  %v366_v24 = vld [vmem:[%s6364_s2 + $0x68] sm:$0xff] }
  0xed   : > { %436 = vperm.xlu1 %4631, %v366_v24   ;;  %3859 = vperm.xlu0 %4630, %v3845_v7  }
  0xef   : > { %1415 = vmatmul.mubr.f32.gmra.mrb[2].mxu0 %v4730_v10 }
  0xf0   : > { %1420 = vmatprep.mubr.f32.mxu0 %v6376_v4 }
  0xf1   : > { %446 = vperm.xlu1 %4631, %v368_v53   ;;  %3896 = vperm.xlu0 %4630, %v3893_v19  }
  0xf3   : > { %1422 = vmatmul.mubr.f32.gmra.mrb[4].mxu0 %v4732_v11 }
  0xf4   : > { %1427 = vmatprep.mubr.f32.mxu0 %v6376_v4 }
  0xf5   : > { %1753 = vperm.xlu1 %4631, %v1739_v56   ;;  %v5282_v56 = vand.u32 4294901760, %v1733_v47 }
  0xf7   : > { %1429 = vmatmul.mubr.f32.gmra.mrb[6].mxu0 %v4735_v13  ;;  %6466 = vst [vmem:[#allocation9_spill] sm:$0xff] %v5282_v56 }
  0xf8   : > { %1434 = vmatprep.mubr.f32.mxu0 %v6376_v4 }
  0xf9   : > { %1763 = vperm.xlu1 %4631, %v1741_v59  }
  0xfb   : > { %1436 = vmatmul.mubr.f32.gmra.mrb[8].mxu0 %v4814_v45 }
  0xfc   : > { %1441 = vmatprep.mubr.f32.mxu0 %v6376_v4 }
  0xfd   : > { %1773 = vperm.xlu1 %4631, %v1743_v62  }
  0xff   : > { %1443 = vmatmul.mubr.f32.gmra.mrb[10].mxu0 %v4825_v48 }
 0x100   : > { %1448 = vmatprep.mubr.f32.mxu0 %v6376_v4 }
 0x101   : > { %1783 = vperm.xlu1 %4631, %v1745_v1  }
 0x103   : > { %1450 = vmatmul.mubr.f32.gmra.mrb[12].mxu0 %v4836_v51 }
 0x104   : > { %1455 = vmatprep.mubr.f32.mxu0 %v6376_v4  ;;  %v372_v26 = vpop.permute.xlu0 %371 }
 0x105   : > { %3015 = vperm.xlu1 %4631, %v3005_v5  }
 0x107   : > { %1457 = vmatmul.mubr.f32.gmra.mrb[14].mxu0 %v4847_v54 }
 0x108   : > { %1462 = vmatprep.mubr.f32.mxu0 %v6376_v4  ;;  %v5247_v30 = vpop.permute.xlu0 %376 }
 0x109   : > { %3025 = vperm.xlu1 %4631, %v3007_v8  }
 0x10b   : > { %1464 = vmatmul.mubr.f32.gmra.mrb[16].mxu0 %v4855_v57 }
 0x10c   : > { %1469 = vmatprep.mubr.f32.mxu0 %v6376_v4  ;;  %v392_v36 = vpop.permute.xlu0 %391 }
 0x10d   : > { %3854 = vperm.xlu1 %4631, %v3844_v20   ;;  %v6375_v20 = vand.u32 4294901760, %v5270_v49 }
 0x10f   : > { %1471 = vmatmul.mubr.f32.gmra.mrb[18].mxu0 %v4863_v60 }
 0x110   : > { %1476 = vmatprep.mubr.f32.mxu0 %v6376_v4 }
 0x111   : > { %3864 = vperm.xlu1 %4631, %v3846_v14   ;;  %v6373_v14 = vand.u32 4294901760, %v5273_v50 }
 0x113   : > { %1478 = vmatmul.mubr.f32.gmra.mrb[20].mxu0 %v4871_v63  ;;  %v5245_v22 = vpop.permute.xlu1 %381 }
 0x114   : > { %1483 = vmatprep.mubr.f32.mxu0 %v6376_v4 }
 0x117   : > { %1485 = vmatmul.mubr.f32.gmra.mrb[22].mxu0 %v4879_v2  ;;  %v5249_v31 = vpop.permute.xlu1 %386 }
 0x118   : > { %1490 = vmatprep.mubr.f32.mxu0 %v6376_v4 }
 0x11b   : > { %1492 = vmatmul.mubr.f32.gmra.mrb[24].mxu0 %v4887_v6 }
 0x11c   : > { %1497 = vmatprep.mubr.f32.mxu0 %v6376_v4 }
 0x11f   : > { %1499 = vmatmul.mubr.f32.gmra.mrb[26].mxu0 %v4895_v12 }
 0x120   : > { %1504 = vmatprep.mubr.f32.mxu0 %v6376_v4 }
 0x123   : > { %1506 = vmatmul.mubr.f32.gmra.mrb[28].mxu0 %v4906_v25 }
 0x124   : > { %1511 = vmatprep.mubr.f32.mxu0 %v6376_v4 }
 0x127   : > { %1513 = vmatmul.mubr.f32.gmra.mrb[30].mxu0 %v4914_v27 }
 0x128   : > { %1585 = vmatprep.mubr.f32.mxu0 %v6376_v4 }
 0x12b   : > { %1587 = vmatmul.mubr.f32.vlgmr.msra.gmra.mrb[0].mxu0 %v4728_v9  ;;  %v615_v9 = vpop.f32.mrb[0].mxu1 }
 0x12c   : > { %1592 = vmatprep.mubr.f32.mxu0 %v6376_v4  ;;  %v5275_v52 = vadd.f32 %v615_v9, %v392_v36 }
 0x12f   : > { %1594 = vmatmul.mubr.f32.gmra.mrb[2].mxu0 %v4730_v10  ;;  %v617_v10 = vpop.f32.mrb[1].mxu1 }
 0x130   : > { %1599 = vmatprep.mubr.f32.mxu0 %v6376_v4  ;;  %v5277_v53 = vadd.f32 %v617_v10, %v392_v36 }
 0x133   : > { %1601 = vmatmul.mubr.f32.gmra.mrb[4].mxu0 %v4732_v11  ;;  %v626_v11 = vpop.f32.mrb[2].mxu1 }
 0x134   : > { %1606 = vmatprep.mubr.f32.mxu0 %v6376_v4 }
 0x137   : > { %1608 = vmatmul.mubr.f32.gmra.mrb[6].mxu0 %v4735_v13  ;;  %v628_v13 = vpop.f32.mrb[3].mxu1 }
 0x138   : > { %1613 = vmatprep.mubr.f32.mxu0 %v6376_v4 }
 0x13b   : > { %1615 = vmatmul.mubr.f32.gmra.mrb[8].mxu0 %v4814_v45  ;;  %v402_v32 = vpop.permute.xlu0 %401 }
 0x13c   : > { %1620 = vmatprep.mubr.f32.mxu0 %v6376_v4 }
 0x13f   : > { %1622 = vmatmul.mubr.f32.gmra.mrb[10].mxu0 %v4825_v48  ;;  %v412_v35 = vpop.permute.xlu0 %411 }
 0x140   : > { %1627 = vmatprep.mubr.f32.mxu0 %v6376_v4  ;;  %v397_v28 = vpop.permute.xlu1 %396 }
 0x141   : > { %v5284_v58 = vadd.f32 %v626_v11, %v397_v28  ;;  %v5286_v59 = vadd.f32 %v628_v13, %v397_v28  ;;  %v6372_v13 = vand.u32 4294901760, %v5280_v55  ;;  %v1734_v28 = vld [vmem:[%s6365_s3 + $0x20] sm:$0xff] }
 0x143   : > { %1629 = vmatmul.mubr.f32.gmra.mrb[12].mxu0 %v4836_v51  ;;  %v422_v41 = vpop.permute.xlu0 %421 }
 0x144   : > { %1634 = vmatprep.mubr.f32.mxu0 %v6376_v4  ;;  %v407_v34 = vpop.permute.xlu1 %406 }
 0x147   : > { %1636 = vmatmul.mubr.f32.gmra.mrb[14].mxu0 %v4847_v54  ;;  %v432_v24 = vpop.permute.xlu0 %431 }
 0x148   : > { %1641 = vmatprep.mubr.f32.mxu0 %v6376_v4  ;;  %v637_v45 = vpop.f32.mrb[4].mxu1  ;;  %v417_v37 = vpop.permute.xlu1 %416 }
 0x149   : > { %v639_v48 = vpop.f32.mrb[5].mxu1  ;;  %v5288_v61 = vadd.f32 %v637_v45, %v402_v32  ;;  %v5312_v45 = vsub.f32 %v1733_v47, %v5282_v56 }
 0x14a   : > { %v5290_v62 = vadd.f32 %v639_v48, %v402_v32 }
 0x14b   : > { %1643 = vmatmul.mubr.f32.gmra.mrb[16].mxu0 %v4855_v57  ;;  %6467 = vst [vmem:[#allocation10_spill] sm:$0xff] %v5312_v45 }
 0x14c   : > { %1648 = vmatprep.mubr.f32.mxu0 %v6376_v4  ;;  %v648_v51 = vpop.f32.mrb[6].mxu1  ;;  %v427_v44 = vpop.permute.xlu1 %426 }
 0x14d   : > { %v650_v54 = vpop.f32.mrb[7].mxu1  ;;  %v5292_v1 = vadd.f32 %v648_v51, %v407_v34 }
 0x14e   : > { %v5294_v3 = vadd.f32 %v650_v54, %v407_v34 }
 0x14f   : > { %1650 = vmatmul.mubr.f32.gmra.mrb[18].mxu0 %v4863_v60 }
 0x150   : > { %1655 = vmatprep.mubr.f32.mxu0 %v6376_v4  ;;  %v659_v57 = vpop.f32.mrb[8].mxu1 }
 0x151   : > { %v661_v60 = vpop.f32.mrb[9].mxu1  ;;  %v5296_v5 = vadd.f32 %v659_v57, %v412_v35 }
 0x152   : > { %v5298_v7 = vadd.f32 %v661_v60, %v412_v35  ;;  %v6374_v35 = vand.u32 4294901760, %v5312_v45 }
 0x153   : > { %1657 = vmatmul.mubr.f32.gmra.mrb[20].mxu0 %v4871_v63 }
 0x154   : > { %1662 = vmatprep.mubr.f32.mxu0 %v6376_v4  ;;  %v670_v63 = vpop.f32.mrb[10].mxu1 }
 0x155   : > { %v5300_v8 = vadd.f32 %v670_v63, %v417_v37  ;;  %v442_v63 = vpop.permute.xlu0 %441 }
 0x157   : > { %1664 = vmatmul.mubr.f32.gmra.mrb[22].mxu0 %v4879_v2  ;;  %v672_v2 = vpop.f32.mrb[11].mxu1 }
 0x158   : > { %1669 = vmatprep.mubr.f32.mxu0 %v6376_v4  ;;  %v5302_v19 = vadd.f32 %v672_v2, %v417_v37 }
 0x15b   : > { %1671 = vmatmul.mubr.f32.gmra.mrb[24].mxu0 %v4887_v6  ;;  %v681_v6 = vpop.f32.mrb[12].mxu1 }
 0x15c   : > { %1676 = vmatprep.mubr.f32.mxu0 %v6376_v4  ;;  %v5306_v10 = vadd.f32 %v681_v6, %v422_v41 }
 0x15f   : > { %1678 = vmatmul.mubr.f32.gmra.mrb[26].mxu0 %v4895_v12  ;;  %v683_v12 = vpop.f32.mrb[13].mxu1 }
 0x160   : > { %1683 = vmatprep.mubr.f32.mxu0 %v6376_v4  ;;  %v692_v17 = vpop.f32.mrb[14].mxu1  ;;  %v5308_v11 = vadd.f32 %v683_v12, %v422_v41  ;;  %v5357_v41 = vand.u32 4294901760, %v1734_v28 }
 0x161   : > { %v5314_v54 = vadd.f32 %v692_v17, %v427_v44  ;;  %v5334_v17 = vsub.f32 %v5270_v49, %v6375_v20 }
 0x162   : > { %6469 = vst [vmem:[#allocation12_spill] sm:$0xff] %v5357_v41 }
 0x163   : > { %1685 = vmatmul.mubr.f32.gmra.mrb[28].mxu0 %v4906_v25  ;;  %v694_v25 = vpop.f32.mrb[15].mxu1 }
 0x164   : > { %1690 = vmatprep.mubr.f32.mxu0 %v6376_v4  ;;  %v5316_v57 = vadd.f32 %v694_v25, %v427_v44  ;;  %v5339_v25 = vsub.f32 %v5273_v50, %v6373_v14 }
 0x167   : > { %1692 = vmatmul.mubr.f32.gmra.mrb[30].mxu0 %v4914_v27 }
 0x16c   : > { %v437_v0 = vpop.permute.xlu1 %436 }
 0x184   : > { %v703_v29 = vpop.f32.mrb[16].mxu1 }
 0x185   : > { %v705_v23 = vpop.f32.mrb[17].mxu1  ;;  %v5318_v60 = vadd.f32 %v703_v29, %v432_v24  ;;  %v1735_v29 = vld [vmem:[%s6365_s3 + $0x28] sm:$0xff] }
 0x186   : > { %v5320_v36 = vadd.f32 %v705_v23, %v432_v24  ;;  %v447_v23 = vpop.permute.xlu1 %446  ;;  %v5363_v24 = vand.u32 4294901760, %v1735_v29 }
 0x188   : > { %v714_v15 = vpop.f32.mrb[18].mxu1  ;;  %6470 = vst [vmem:[#allocation13_spill] sm:$0xff] %v5363_v24  ;;  %v5385_v14 = vsub.f32 %v1735_v29, %v5363_v24 }
 0x189   : > { %v716_v27 = vpop.f32.mrb[19].mxu1  ;;  %v5322_v6 = vadd.f32 %v714_v15, %v437_v0 }
 0x18a   : > { %v5324_v12 = vadd.f32 %v716_v27, %v437_v0  ;;  %6471 = vst [vmem:[#allocation14_spill] sm:$0xff] %v5385_v14 }
 0x18c   : > { %v725_v18 = vpop.f32.mrb[20].mxu1 }
 0x18d   : > { %v5239_v33 = vpop.f32.mrb[21].mxu1  ;;  %v5329_v34 = vadd.f32 %v725_v18, %v442_v63 }
 0x18e   : > { %v5345_v18 = vadd.f32 %v5239_v33, %v442_v63 }
 0x190   : > { %v5241_v16 = vpop.f32.mrb[22].mxu1 }
 0x191   : > { %v5243_v21 = vpop.f32.mrb[23].mxu1  ;;  %v5355_v40 = vadd.f32 %v5241_v16, %v447_v23 }
 0x192   : > { %v5361_v47 = vadd.f32 %v5243_v21, %v447_v23  ;;  %v5375_v21 = vsub.f32 %v5312_v45, %v6374_v35 }
 0x1fe   : > { %v1588_v9 = vpop.f32.mrb[0].mxu0 }
 0x1ff   : > { %v4283_v48 = vadd.f32 %v1588_v9, %v372_v26  ;;  %v1590_v51 = vpop.f32.mrb[1].mxu0 }
 0x200   : > { %v4284_v2 = vadd.f32 %v1590_v51, %v372_v26  ;;  %v5350_v26 = vsub.f32 %v5280_v55, %v6372_v13 }
 0x201   : > { %v1698_v32 = vmax.f32 %v4283_v48, 0.0 }
 0x202   : > { %v1699_v15 = vmax.f32 %v4284_v2, 0.0  ;;  %v1595_v27 = vpop.f32.mrb[2].mxu0  ;;  %6468 = vst [vmem:[#allocation11_spill] sm:$0xff] %v5350_v26 }
 0x203   : > { %v1788_v37 = vand.u32 4294901760, %v1698_v32  ;;  %v4285_v38 = vadd.f32 %v1595_v27, %v5247_v30  ;;  %v1597_v39 = vpop.f32.mrb[3].mxu0 }
 0x204   : > { %v1786_v44 = vand.u32 4294901760, %v1699_v15  ;;  %v4286_v33 = vadd.f32 %v1597_v39, %v5247_v30  ;;  %v5380_v39 = vsub.f32 %v1734_v28, %v5357_v41 }
 0x205   : > { %v5365_v0 = vsub.f32 %v1698_v32, %v1788_v37  ;;  %v1700_v9 = vmax.f32 %v4285_v38, 0.0 }
 0x206   : > { %v5369_v63 = vsub.f32 %v1699_v15, %v1786_v44  ;;  %v1701_v16 = vmax.f32 %v4286_v33, 0.0  ;;  %v1602_v2 = vpop.f32.mrb[4].mxu0 }
 0x207   : > { %v6380_v30 = vand.u32 4294901760, %v5365_v0  ;;  %v1792_v32 = vand.u32 4294901760, %v1700_v9  ;;  %v4287_v23 = vadd.f32 %v1602_v2, %v5245_v22  ;;  %v1604_v38 = vpop.f32.mrb[5].mxu0 }
 0x208   : > { %v6381_v15 = vand.u32 4294901760, %v5369_v63  ;;  %v1790_v33 = vand.u32 4294901760, %v1701_v16  ;;  %v4288_v13 = vadd.f32 %v1604_v38, %v5245_v22 }
 0x209   : > { %v1980_v35 = vsub.f32 %v5365_v0, %v6380_v30  ;;  %v5390_v20 = vpack.c.bf16 %v1792_v32, %v1788_v37  ;;  %v5392_v27 = vsub.f32 %v1700_v9, %v1792_v32  ;;  %v1702_v2 = vmax.f32 %v4287_v23, 0.0 }
 0x20a   : > { %v5394_v51 = vsub.f32 %v1701_v16, %v1790_v33  ;;  %v1703_v28 = vmax.f32 %v4288_v13, 0.0  ;;  %v1609_v4 = vpop.f32.mrb[6].mxu0  ;;  %v5396_v48 = vpack.c.bf16 %v1790_v33, %v1786_v44  ;;  %v1974_v22 = vsub.f32 %v5369_v63, %v6381_v15 }
 0x20b   : > { %6472 = vst [vmem:[#allocation15_spill] sm:$0xff] %v5390_v20  ;;  %v1981_v29 = vand.u32 4294901760, %v1980_v35  ;;  %v6382_v38 = vand.u32 4294901760, %v5392_v27  ;;  %v1796_v45 = vand.u32 4294901760, %v1702_v2  ;;  %v4289_v37 = vadd.f32 %v1609_v4, %v5249_v31  ;;  %v1611_v30 = vpop.f32.mrb[7].mxu0 }
 0x20c   : > { %6473 = vst [vmem:[#allocation16_spill] sm:$0xff] %v5396_v48  ;;  %v1794_v32 = vand.u32 4294901760, %v1703_v28  ;;  %v4290_v16 = vadd.f32 %v1611_v30, %v5249_v31  ;;  %3994 = vmatprep.subr.bf16.mxu1 %v5396_v48  ;;  %v1975_v13 = vand.u32 4294901760, %v1974_v22  ;;  %v6474_v31 = vand.u32 4294901760, %v5394_v51 }
 0x20d   : > { %v1992_v44 = vsub.f32 %v5392_v27, %v6382_v38  ;;  %v5409_v23 = vsub.f32 %v1702_v2, %v1796_v45  ;;  %v1704_v35 = vmax.f32 %v4289_v37, 0.0  ;;  %3996 = vmatpush1.bf16.msra.mxu1 %v5390_v20 }
 0x20e   : > { %v5414_v33 = vsub.f32 %v1703_v28, %v1794_v32  ;;  %v1705_v15 = vmax.f32 %v4290_v16, 0.0  ;;  %v1616_v9 = vpop.f32.mrb[8].mxu0  ;;  %v1986_v30 = vsub.f32 %v5394_v51, %v6474_v31 }
 0x20f   : > { %v1993_v38 = vand.u32 4294901760, %v1992_v44  ;;  %v6397_v2 = vand.u32 4294901760, %v5409_v23  ;;  %v1800_v37 = vand.u32 4294901760, %v1704_v35  ;;  %v4292_v55 = vadd.f32 %v1616_v9, %v5275_v52  ;;  %v1618_v50 = vpop.f32.mrb[9].mxu0 }
 0x210   : > { %v1798_v28 = vand.u32 4294901760, %v1705_v15  ;;  %v4294_v16 = vadd.f32 %v1618_v50, %v5277_v53  ;;  %v1987_v20 = vand.u32 4294901760, %v1986_v30 }
 0x211   : > { %v2004_v31 = vsub.f32 %v5409_v23, %v6397_v2  ;;  %v5428_v49 = vpack.c.bf16 %v1800_v37, %v1796_v45  ;;  %v5430_v22 = vsub.f32 %v1704_v35, %v1800_v37  ;;  %v1706_v44 = vmax.f32 %v4292_v55, 0.0 }
 0x212   : > { %v5432_v48 = vsub.f32 %v1705_v15, %v1798_v28  ;;  %v1707_v24 = vmax.f32 %v4294_v16, 0.0  ;;  %v1623_v52 = vpop.f32.mrb[10].mxu0  ;;  %v5434_v9 = vpack.c.bf16 %v1798_v28, %v1794_v32  ;;  %v5436_v4 = vpack.c.bf16 %v1987_v20, %v1975_v13 }
 0x213   : > { %6475 = vst [vmem:[#allocation17_spill] sm:$0xff] %v5428_v49  ;;  %v2005_v41 = vand.u32 4294901760, %v2004_v31  ;;  %v6398_v50 = vand.u32 4294901760, %v5430_v22  ;;  %v1804_v53 = vand.u32 4294901760, %v1706_v44  ;;  %v4296_v30 = vadd.f32 %v1623_v52, %v5284_v58  ;;  %v1625_v2 = vpop.f32.mrb[11].mxu0 }
 0x214   : > { %6476 = vst [vmem:[#allocation18_spill] sm:$0xff] %v5434_v9  ;;  %v6399_v45 = vand.u32 4294901760, %v5432_v48  ;;  %v1802_v35 = vand.u32 4294901760, %v1707_v24  ;;  %v4298_v55 = vadd.f32 %v1625_v2, %v5286_v59  ;;  %3998 = vmatprep.subr.bf16.mxu1 %v5434_v9  ;;  %v5443_v15 = vpack.c.bf16 %v1993_v38, %v1981_v29 }
 0x215   : > { %v2016_v20 = vsub.f32 %v5430_v22, %v6398_v50  ;;  %v5448_v32 = vsub.f32 %v1706_v44, %v1804_v53  ;;  %v1708_v13 = vmax.f32 %v4296_v30, 0.0  ;;  %4000 = vmatpush1.bf16.msra.mxu1 %v5428_v49  ;;  %v6477_v58 = vand.u32 4294901760, %v5414_v33 }
 0x216   : > { %v5454_v28 = vsub.f32 %v1707_v24, %v1802_v35  ;;  %v1709_v59 = vmax.f32 %v4298_v55, 0.0  ;;  %v1630_v2 = vpop.f32.mrb[12].mxu0  ;;  %v2010_v29 = vsub.f32 %v5432_v48, %v6399_v45 }
 0x217   : > { %v1998_v37 = vsub.f32 %v5414_v33, %v6477_v58  ;;  %v2017_v16 = vand.u32 4294901760, %v2016_v20  ;;  %v6410_v31 = vand.u32 4294901760, %v5448_v32  ;;  %v1808_v44 = vand.u32 4294901760, %v1708_v13  ;;  %v1632_v30 = vpop.f32.mrb[13].mxu0 }
 0x218   : > { %v4300_v52 = vadd.f32 %v1630_v2, %v5288_v61  ;;  %v1806_v24 = vand.u32 4294901760, %v1709_v59  ;;  %v4302_v55 = vadd.f32 %v1632_v30, %v5290_v62  ;;  %v2011_v58 = vand.u32 4294901760, %v2010_v29 }
 0x219   : > { %v1999_v50 = vand.u32 4294901760, %v1998_v37  ;;  %v2028_v45 = vsub.f32 %v5448_v32, %v6410_v31  ;;  %v5468_v49 = vpack.c.bf16 %v1808_v44, %v1804_v53  ;;  %v5470_v38 = vsub.f32 %v1708_v13, %v1808_v44 }
 0x21a   : > { %v1710_v20 = vmax.f32 %v4300_v52, 0.0  ;;  %v5472_v9 = vsub.f32 %v1709_v59, %v1806_v24  ;;  %v1711_v56 = vmax.f32 %v4302_v55, 0.0  ;;  %v1637_v61 = vpop.f32.mrb[14].mxu0  ;;  %v5474_v2 = vpack.c.bf16 %v1806_v24, %v1802_v35 }
 0x21b   : > { %6478 = vst [vmem:[#allocation19_spill] sm:$0xff] %v5468_v49  ;;  %v2029_v46 = vand.u32 4294901760, %v2028_v45  ;;  %v6411_v62 = vand.u32 4294901760, %v5470_v38  ;;  %v4304_v30 = vadd.f32 %v1637_v61, %v5292_v1  ;;  %v1639_v43 = vpop.f32.mrb[15].mxu0  ;;  %v5481_v59 = vpack.c.bf16 %v2011_v58, %v1999_v50 }
 0x21c   : > { %6479 = vst [vmem:[#allocation20_spill] sm:$0xff] %v5474_v2  ;;  %v1812_v37 = vand.u32 4294901760, %v1710_v20  ;;  %v6412_v53 = vand.u32 4294901760, %v5472_v9  ;;  %v1810_v31 = vand.u32 4294901760, %v1711_v56  ;;  %v4306_v13 = vadd.f32 %v1639_v43, %v5294_v3  ;;  %4002 = vmatprep.subr.bf16.mxu1 %v5474_v2 }
 0x21d   : > { %v2040_v35 = vsub.f32 %v5470_v38, %v6411_v62  ;;  %v1712_v29 = vmax.f32 %v4304_v30, 0.0  ;;  %4004 = vmatpush1.bf16.msra.mxu1 %v5468_v49  ;;  %v5489_v1 = vpack.c.bf16 %v2017_v16, %v2005_v41  ;;  %v6480_v43 = vand.u32 4294901760, %v5454_v28 }
 0x21e   : > { %v5486_v45 = vsub.f32 %v1710_v20, %v1812_v37  ;;  %v5491_v44 = vsub.f32 %v1711_v56, %v1810_v31  ;;  %v1713_v52 = vmax.f32 %v4306_v13, 0.0  ;;  %v1644_v24 = vpop.f32.mrb[16].mxu0  ;;  %v2034_v50 = vsub.f32 %v5472_v9, %v6412_v53 }
 0x21f   : > { %v2022_v3 = vsub.f32 %v5454_v28, %v6480_v43  ;;  %v2041_v58 = vand.u32 4294901760, %v2040_v35  ;;  %v1816_v20 = vand.u32 4294901760, %v1712_v29  ;;  %v4308_v61 = vadd.f32 %v1644_v24, %v5296_v5  ;;  %v1646_v41 = vpop.f32.mrb[17].mxu0 }
 0x220   : > { %v6420_v55 = vand.u32 4294901760, %v5486_v45  ;;  %v1814_v16 = vand.u32 4294901760, %v1713_v52  ;;  %v4310_v30 = vadd.f32 %v1646_v41, %v5298_v7  ;;  %v2035_v56 = vand.u32 4294901760, %v2034_v50 }
 0x221   : > { %v2023_v13 = vand.u32 4294901760, %v2022_v3  ;;  %v5506_v62 = vpack.c.bf16 %v1816_v20, %v1812_v37  ;;  %v5508_v53 = vsub.f32 %v1712_v29, %v1816_v20  ;;  %v1714_v35 = vmax.f32 %v4308_v61, 0.0 }
 0x222   : > { %v2052_v43 = vsub.f32 %v5486_v45, %v6420_v55  ;;  %v5510_v49 = vsub.f32 %v1713_v52, %v1814_v16  ;;  %v1715_v2 = vmax.f32 %v4310_v30, 0.0  ;;  %v1651_v5 = vpop.f32.mrb[18].mxu0  ;;  %v5512_v24 = vpack.c.bf16 %v1814_v16, %v1810_v31 }
 0x223   : > { %6481 = vst [vmem:[#allocation21_spill] sm:$0xff] %v5506_v62  ;;  %v6421_v7 = vand.u32 4294901760, %v5508_v53  ;;  %v1820_v3 = vand.u32 4294901760, %v1714_v35  ;;  %v4312_v41 = vadd.f32 %v1651_v5, %v5300_v8  ;;  %v1653_v14 = vpop.f32.mrb[19].mxu0  ;;  %v5519_v52 = vpack.c.bf16 %v2035_v56, %v2023_v13 }
 0x224   : > { %6482 = vst [vmem:[#allocation22_spill] sm:$0xff] %v5512_v24  ;;  %v2053_v42 = vand.u32 4294901760, %v2052_v43  ;;  %v6422_v37 = vand.u32 4294901760, %v5510_v49  ;;  %v1818_v55 = vand.u32 4294901760, %v1715_v2  ;;  %v4314_v29 = vadd.f32 %v1653_v14, %v5302_v19  ;;  %4006 = vmatprep.subr.bf16.mxu1 %v5512_v24 }
 0x225   : > { %v2064_v31 = vsub.f32 %v5508_v53, %v6421_v7  ;;  %v5524_v50 = vsub.f32 %v1714_v35, %v1820_v3  ;;  %v1716_v20 = vmax.f32 %v4312_v41, 0.0  ;;  %4008 = vmatpush1.bf16.msra.mxu1 %v5506_v62  ;;  %v5527_v8 = vpack.c.bf16 %v2041_v58, %v2029_v46 }
 0x226   : > { %v5529_v61 = vsub.f32 %v1715_v2, %v1818_v55  ;;  %v1717_v16 = vmax.f32 %v4314_v29, 0.0  ;;  %v1658_v30 = vpop.f32.mrb[20].mxu0  ;;  %v6484_v19 = vand.u32 4294901760, %v5491_v44  ;;  %v2058_v56 = vsub.f32 %v5510_v49, %v6422_v37 }
 0x227   : > { %6483 = vst [vmem:[#allocation23_spill] sm:$0xff] %v5527_v8  ;;  %v2065_v13 = vand.u32 4294901760, %v2064_v31  ;;  %v6428_v43 = vand.u32 4294901760, %v5524_v50  ;;  %v1824_v35 = vand.u32 4294901760, %v1716_v20  ;;  %v4316_v5 = vadd.f32 %v1658_v30, %v5306_v10  ;;  %v1660_v46 = vpop.f32.mrb[21].mxu0 }
 0x228   : > { %v2046_v14 = vsub.f32 %v5491_v44, %v6484_v19  ;;  %v1822_v58 = vand.u32 4294901760, %v1717_v16  ;;  %v4318_v41 = vadd.f32 %v1660_v46, %v5308_v11  ;;  %v2059_v2 = vand.u32 4294901760, %v2058_v56 }
 0x229   : > { %v2076_v19 = vsub.f32 %v5524_v50, %v6428_v43  ;;  %v5544_v7 = vpack.c.bf16 %v1824_v35, %v1820_v3  ;;  %v5546_v37 = vsub.f32 %v1716_v20, %v1824_v35  ;;  %v1718_v31 = vmax.f32 %v4316_v5, 0.0 }
 0x22a   : > { %v2047_v29 = vand.u32 4294901760, %v2046_v14  ;;  %v5548_v62 = vsub.f32 %v1717_v16, %v1822_v58  ;;  %v1719_v24 = vmax.f32 %v4318_v41, 0.0  ;;  %v1665_v10 = vpop.f32.mrb[22].mxu0  ;;  %v5550_v30 = vpack.c.bf16 %v1822_v58, %v1818_v55 }
 0x22b   : > { %6485 = vst [vmem:[#allocation24_spill] sm:$0xff] %v5544_v7  ;;  %v2077_v8 = vand.u32 4294901760, %v2076_v19  ;;  %v6429_v11 = vand.u32 4294901760, %v5546_v37  ;;  %v1828_v14 = vand.u32 4294901760, %v1718_v31  ;;  %v4320_v46 = vadd.f32 %v1665_v10, %v5314_v54  ;;  %v1667_v26 = vpop.f32.mrb[23].mxu0 }
 0x22c   : > { %6486 = vst [vmem:[#allocation25_spill] sm:$0xff] %v5550_v30  ;;  %v6430_v3 = vand.u32 4294901760, %v5548_v62  ;;  %v1826_v43 = vand.u32 4294901760, %v1719_v24  ;;  %v4322_v20 = vadd.f32 %v1667_v26, %v5316_v57  ;;  %4010 = vmatprep.subr.bf16.mxu1 %v5550_v30  ;;  %v5557_v16 = vpack.c.bf16 %v2059_v2, %v2047_v29 }
 0x22d   : > { %v2088_v55 = vsub.f32 %v5546_v37, %v6429_v11  ;;  %v5562_v56 = vsub.f32 %v1718_v31, %v1828_v14  ;;  %v1720_v35 = vmax.f32 %v4320_v46, 0.0  ;;  %4012 = vmatpush1.bf16.msra.mxu1 %v5544_v7  ;;  %v5565_v54 = vpack.c.bf16 %v2065_v13, %v2053_v42 }
 0x22e   : > { %6487 = vst [vmem:[#allocation26_spill] sm:$0xff] %v5557_v16  ;;  %v5567_v5 = vsub.f32 %v1719_v24, %v1826_v43  ;;  %v1721_v58 = vmax.f32 %v4322_v20, 0.0  ;;  %v1672_v41 = vpop.f32.mrb[24].mxu0  ;;  %v6489_v57 = vand.u32 4294901760, %v5529_v61  ;;  %v2082_v2 = vsub.f32 %v5548_v62, %v6430_v3 }
 0x22f   : > { %6488 = vst [vmem:[#allocation27_spill] sm:$0xff] %v5565_v54  ;;  %v2089_v29 = vand.u32 4294901760, %v2088_v55  ;;  %v6435_v19 = vand.u32 4294901760, %v5562_v56  ;;  %v1832_v31 = vand.u32 4294901760, %v1720_v35  ;;  %v4324_v10 = vadd.f32 %v1672_v41, %v5318_v60  ;;  %v1674_v42 = vpop.f32.mrb[25].mxu0 }
 0x230   : > { %v2070_v26 = vsub.f32 %v5529_v61, %v6489_v57  ;;  %v1830_v13 = vand.u32 4294901760, %v1721_v58  ;;  %v4326_v46 = vadd.f32 %v1674_v42, %v5320_v36  ;;  %v2083_v24 = vand.u32 4294901760, %v2082_v2 }
 0x231   : > { %v2100_v57 = vsub.f32 %v5562_v56, %v6435_v19  ;;  %v5582_v11 = vpack.c.bf16 %v1832_v31, %v1828_v14  ;;  %v5584_v3 = vsub.f32 %v1720_v35, %v1832_v31  ;;  %v1722_v55 = vmax.f32 %v4324_v10, 0.0 }
 0x232   : > { %v2071_v20 = vand.u32 4294901760, %v2070_v26  ;;  %v5586_v7 = vsub.f32 %v1721_v58, %v1830_v13  ;;  %v1723_v30 = vmax.f32 %v4326_v46, 0.0  ;;  %v1679_v60 = vpop.f32.mrb[26].mxu0  ;;  %v5588_v41 = vpack.c.bf16 %v1830_v13, %v1826_v43 }
 0x233   : > { %6490 = vst [vmem:[#allocation28_spill] sm:$0xff] %v5582_v11  ;;  %v2101_v54 = vand.u32 4294901760, %v2100_v57  ;;  %v6436_v36 = vand.u32 4294901760, %v5584_v3  ;;  %v1836_v26 = vand.u32 4294901760, %v1722_v55  ;;  %v4328_v42 = vadd.f32 %v1679_v60, %v5322_v6  ;;  %v1681_v16 = vpop.f32.mrb[27].mxu0 }
 0x234   : > { %6491 = vst [vmem:[#allocation29_spill] sm:$0xff] %v5588_v41  ;;  %v6437_v14 = vand.u32 4294901760, %v5586_v7  ;;  %v1834_v19 = vand.u32 4294901760, %v1723_v30  ;;  %v4330_v35 = vadd.f32 %v1681_v16, %v5324_v12  ;;  %4014 = vmatprep.subr.bf16.mxu1 %v5588_v41  ;;  %v5595_v58 = vpack.c.bf16 %v2083_v24, %v2071_v20 }
 0x235   : > { %v2112_v43 = vsub.f32 %v5584_v3, %v6436_v36  ;;  %v5600_v2 = vsub.f32 %v1722_v55, %v1836_v26  ;;  %v1724_v31 = vmax.f32 %v4328_v42, 0.0  ;;  %4016 = vmatpush1.bf16.msra.mxu1 %v5582_v11  ;;  %v5603_v6 = vpack.c.bf16 %v2089_v29, %v2077_v8 }
 0x236   : > { %6492 = vst [vmem:[#allocation30_spill] sm:$0xff] %v5595_v58  ;;  %v5605_v10 = vsub.f32 %v1723_v30, %v1834_v19  ;;  %v1725_v13 = vmax.f32 %v4330_v35, 0.0  ;;  %v1686_v46 = vpop.f32.mrb[28].mxu0  ;;  %v6494_v12 = vand.u32 4294901760, %v5567_v5  ;;  %v2106_v24 = vsub.f32 %v5586_v7, %v6437_v14 }
 0x237   : > { %6493 = vst [vmem:[#allocation31_spill] sm:$0xff] %v5603_v6  ;;  %v2113_v20 = vand.u32 4294901760, %v2112_v43  ;;  %v6442_v57 = vand.u32 4294901760, %v5600_v2  ;;  %v1840_v55 = vand.u32 4294901760, %v1724_v31  ;;  %v4332_v60 = vadd.f32 %v1686_v46, %v5329_v34  ;;  %v1688_v8 = vpop.f32.mrb[29].mxu0 }
 0x238   : > { %v2094_v16 = vsub.f32 %v5567_v5, %v6494_v12  ;;  %v1838_v29 = vand.u32 4294901760, %v1725_v13  ;;  %v4334_v42 = vadd.f32 %v1688_v8, %v5345_v18  ;;  %v2107_v30 = vand.u32 4294901760, %v2106_v24 }
 0x239   : > { %v2124_v12 = vsub.f32 %v5600_v2, %v6442_v57  ;;  %v5620_v36 = vpack.c.bf16 %v1840_v55, %v1836_v26  ;;  %v5622_v14 = vsub.f32 %v1724_v31, %v1840_v55  ;;  %v1726_v43 = vmax.f32 %v4332_v60, 0.0 }
 0x23a   : > { %v2095_v35 = vand.u32 4294901760, %v2094_v16  ;;  %v5624_v11 = vsub.f32 %v1725_v13, %v1838_v29  ;;  %v1727_v41 = vmax.f32 %v4334_v42, 0.0  ;;  %v1693_v34 = vpop.f32.mrb[30].mxu0  ;;  %v5626_v46 = vpack.c.bf16 %v1838_v29, %v1834_v19 }
 0x23b   : > { %6495 = vst [vmem:[#allocation32_spill] sm:$0xff] %v5620_v36  ;;  %v2125_v6 = vand.u32 4294901760, %v2124_v12  ;;  %v6443_v18 = vand.u32 4294901760, %v5622_v14  ;;  %v1844_v16 = vand.u32 4294901760, %v1726_v43  ;;  %v4336_v8 = vadd.f32 %v1693_v34, %v5355_v40  ;;  %v1695_v58 = vpop.f32.mrb[31].mxu0 }
 0x23c   : > { %v6444_v26 = vand.u32 4294901760, %v5624_v11  ;;  %v1842_v57 = vand.u32 4294901760, %v1727_v41  ;;  %v4338_v31 = vadd.f32 %v1695_v58, %v5361_v47  ;;  %4018 = vmatprep.subr.bf16.mxu1 %v5626_v46  ;;  %v5633_v13 = vpack.c.bf16 %v2107_v30, %v2095_v35 }
 0x23d   : > { %v2136_v19 = vsub.f32 %v5622_v14, %v6443_v18  ;;  %v5638_v24 = vsub.f32 %v1726_v43, %v1844_v16  ;;  %v1728_v55 = vmax.f32 %v4336_v8, 0.0  ;;  %4020 = vmatpush1.bf16.msra.mxu1 %v5620_v36  ;;  %v5641_v40 = vpack.c.bf16 %v2113_v20, %v2101_v54 }
 0x23e   : > { %v5643_v60 = vsub.f32 %v1727_v41, %v1842_v57  ;;  %v1729_v29 = vmax.f32 %v4338_v31, 0.0  ;;  %v6496_v47 = vand.u32 4294901760, %v5605_v10  ;;  %v2130_v30 = vsub.f32 %v5624_v11, %v6444_v26 }
 0x23f   : > { %v2137_v42 = vand.u32 4294901760, %v2136_v19  ;;  %v6447_v35 = vand.u32 4294901760, %v5638_v24  ;;  %v1848_v12 = vand.u32 4294901760, %v1728_v55 }
 0x240   : > { %v2118_v58 = vsub.f32 %v5605_v10, %v6496_v47  ;;  %v2141_v54 = vand.u32 4294901760, %v5643_v60  ;;  %v1846_v41 = vand.u32 4294901760, %v1729_v29  ;;  %v2131_v34 = vand.u32 4294901760, %v2130_v30 }
 0x241   : > { %v2148_v8 = vsub.f32 %v5638_v24, %v6447_v35  ;;  %v5658_v31 = vpack.c.bf16 %v1848_v12, %v1844_v16  ;;  %v5660_v47 = vsub.f32 %v1728_v55, %v1848_v12  ;;  %v5662_v19 = vpack.c.bf16 %v2137_v42, %v2125_v6 }
 0x242   : > { %v2119_v20 = vand.u32 4294901760, %v2118_v58  ;;  %v5664_v18 = vsub.f32 %v1729_v29, %v1846_v41  ;;  %v5666_v26 = vpack.c.bf16 %v1846_v41, %v1842_v57  ;;  %v2142_v36 = vsub.f32 %v5643_v60, %v2141_v54 }
 0x243   : > { %6497 = vst [vmem:[#allocation33_spill] sm:$0xff] %v5658_v31  ;;  %v2149_v58 = vand.u32 4294901760, %v2148_v8  ;;  %v2159_v30 = vand.u32 4294901760, %v5660_v47  ;;  %v6500_v57 = vand.u32 4294901760, %v5394_v51  ;;  %v6502_v35 = vand.u32 4294901760, %v5365_v0 }
 0x244   : > { %6498 = vst [vmem:[#allocation34_spill] sm:$0xff] %v5666_v26  ;;  %v5668_v43 = vpack.c.bf16 %v2131_v34, %v2119_v20  ;;  %v2153_v6 = vand.u32 4294901760, %v5664_v18  ;;  %4022 = vmatprep.subr.bf16.mxu1 %v5666_v26  ;;  %v2143_v55 = vand.u32 4294901760, %v2142_v36  ;;  %v6501_v34 = vand.u32 4294901760, %v5334_v17 }
 0x245   : > { %v2160_v42 = vsub.f32 %v5660_v47, %v2159_v30  ;;  %4024 = vmatpush1.bf16.msra.mxu1 %v5658_v31  ;;  %v6504_v41 = vand.u32 4294901760, %v5414_v33  ;;  %v6505_v20 = vand.u32 4294901760, %v5432_v48  ;;  %v6507_v26 = vand.u32 4294901760, %v5409_v23 }
 0x246   : > { %4026 = vmatprep.subr.bf16.mxu1 %v5436_v4  ;;  %v2154_v36 = vsub.f32 %v5664_v18, %v2153_v6  ;;  %v6499_v4 = vand.u32 4294901760, %v5369_v63  ;;  %v6510_v17 = vmov 0.0  }
 0x247   : > { %v2161_v12 = vand.u32 4294901760, %v2160_v42  ;;  %v6503_v42 = vand.u32 4294901760, %v5392_v27  ;;  %v5720_v31 = vpack.c.bf16 %v6505_v20, %v6504_v41  ;;  %v6511_v41 = vand.u32 4294901760, %v5454_v28 }
 0x248   : > { %v5706_v16 = vpack.c.bf16 %v6500_v57, %v6499_v4  ;;  %1888 = vmatmul.mubr.f32.vlgmr.msra.gmra.mrb[24].mxu1 %v6501_v34  ;;  %v2155_v8 = vand.u32 4294901760, %v2154_v36  ;;  %v6508_v57 = vand.u32 4294901760, %v5430_v22  ;;  %v6512_v20 = vand.u32 4294901760, %v5472_v9 }
 0x249   : > { %v5714_v29 = vpack.c.bf16 %v6503_v42, %v6502_v35  ;;  %6506 = vst [vmem:[#allocation35_spill] sm:$0xff] %v5720_v31  ;;  %4028 = vmatpush1.bf16.msra.mxu1 %v5443_v15  ;;  %1893 = vmatprep.mubr.f32.mxu1 %v6510_v17  ;;  %v1736_v35 = vld [vmem:[%s6365_s3 + $0x30] sm:$0xff]  ;;  %v4055_v34 = vpack.c.bf16 %v2161_v12, %v2149_v58  ;;  %v6517_v31 = vand.u32 4294901760, %v5510_v49  ;;  %v6519_v12 = vand.u32 4294901760, %v5486_v45 }
 0x24a   : > { %v5726_v4 = vpack.c.bf16 %v6508_v57, %v6507_v26  ;;  %v5738_v42 = vpack.c.bf16 %v6512_v20, %v6511_v41  ;;  %v6514_v26 = vand.u32 4294901760, %v5448_v32  ;;  %v6515_v57 = vand.u32 4294901760, %v5470_v38  ;;  %4030 = vmatprep.subr.bf16.mxu1 %v5481_v59 }
 0x24b   : > { %v4053_v36 = vpack.c.bf16 %v2155_v8, %v2143_v55  ;;  %v6520_v41 = vand.u32 4294901760, %v5508_v53  ;;  %v6525_v59 = vand.u32 4294901760, %v5524_v50  ;;  %v6526_v55 = vand.u32 4294901760, %v5546_v37 }
 0x24c   : > { %6509 = vst [vmem:[#allocation36_spill] sm:$0xff] %v5726_v4  ;;  %6513 = vst [vmem:[#allocation37_spill] sm:$0xff] %v5738_v42  ;;  %v5744_v15 = vpack.c.bf16 %v6515_v57, %v6514_v26  ;;  %v6516_v4 = vand.u32 4294901760, %v5491_v44  ;;  %v6522_v42 = vand.u32 4294901760, %v5529_v61  ;;  %v6523_v26 = vand.u32 4294901760, %v5548_v62 }
 0x24d   : > { %v5757_v20 = vpack.c.bf16 %v6520_v41, %v6519_v12  ;;  %v5769_v8 = vpack.c.bf16 %v6526_v55, %v6525_v59  ;;  %v6531_v12 = vand.u32 4294901760, %v5562_v56  ;;  %v6532_v41 = vand.u32 4294901760, %v5584_v3  ;;  %4032 = vmatpush1.bf16.msra.mxu1 %v5489_v1 }
 0x24e   : > { %v5751_v58 = vpack.c.bf16 %v6517_v31, %v6516_v4  ;;  %v5763_v57 = vpack.c.bf16 %v6523_v26, %v6522_v42  ;;  %v6528_v31 = vand.u32 4294901760, %v5567_v5  ;;  %v6529_v4 = vand.u32 4294901760, %v5586_v7  ;;  %4034 = vmatprep.subr.bf16.mxu1 %v5519_v52  ;;  %v6545_v52 = vld [vmem:[#allocation26_spill] sm:$0xff] }
 0x24f   : > { %6521 = vst [vmem:[#allocation39_spill] sm:$0xff] %v5757_v20  ;;  %6527 = vst [vmem:[#allocation41_spill] sm:$0xff] %v5769_v8  ;;  %v5781_v20 = vpack.c.bf16 %v6532_v41, %v6531_v12  ;;  %v6533_v42 = vand.u32 4294901760, %v5605_v10  ;;  %v6534_v26 = vand.u32 4294901760, %v5624_v11  ;;  %v6535_v59 = vand.u32 4294901760, %v5339_v25  ;;  %v1737_v25 = vld [vmem:[%s6365_s3 + $0x38] sm:$0xff] }
 0x250   : > { %6518 = vst [vmem:[#allocation38_spill] sm:$0xff] %v5751_v58  ;;  %6524 = vst [vmem:[#allocation40_spill] sm:$0xff] %v5763_v57  ;;  %v5775_v58 = vpack.c.bf16 %v6529_v4, %v6528_v31  ;;  %v5791_v55 = vand.u32 4294901760, %v1736_v35  ;;  %v6536_v31 = vand.u32 4294901760, %v5600_v2  ;;  %v6537_v4 = vand.u32 4294901760, %v5622_v14 }
 0x251   : > { %v5787_v57 = vpack.c.bf16 %v6534_v26, %v6533_v42  ;;  %1899 = vmatmul.mubr.f32.gmra.mrb[26].mxu1 %v6535_v59  ;;  %v5799_v8 = vpack.c.bf16 %v2153_v6, %v2141_v54  ;;  %v6538_v12 = vand.u32 4294901760, %v5638_v24  ;;  %v1920_v42 = vand.u32 4294901760, %v5375_v21  ;;  %v6540_v26 = vld [vmem:[#allocation11_spill] sm:$0xff]  ;;  %v6543_v6 = vld [vmem:[#allocation14_spill] sm:$0xff] }
 0x252   : > { %6530 = vst [vmem:[#allocation42_spill] sm:$0xff] %v5775_v58  ;;  %v5797_v58 = vpack.c.bf16 %v6537_v4, %v6536_v31  ;;  %1904 = vmatprep.mubr.f32.mxu1 %v6510_v17  ;;  %v6541_v59 = vand.u32 4294901760, %v6540_v26  ;;  %v6542_v54 = vand.u32 4294901760, %v5380_v39  ;;  %v1940_v31 = vand.u32 4294901760, %v6543_v6 }
 0x253   : > { %v5803_v41 = vpack.c.bf16 %v2159_v30, %v6538_v12  ;;  %v5819_v1 = vsub.f32 %v1736_v35, %v5791_v55  ;;  %v5821_v4 = vand.u32 4294901760, %v1737_v25  ;;  %v6544_v12 = vld [vmem:[#allocation23_spill] sm:$0xff] }
 0x254   : > { %v1930_v30 = vsub.f32 %v5380_v39, %v6542_v54  ;;  %4036 = vmatpush1.bf16.msra.mxu1 %v6544_v12  ;;  %v1941_v26 = vsub.f32 %v6543_v6, %v1940_v31  ;;  %v6546_v35 = vld [vmem:[#allocation27_spill] sm:$0xff]  ;;  %v6547_v12 = vld [vmem:[#allocation30_spill] sm:$0xff] }
 0x255   : > { %6539 = vst [vmem:[#allocation43_spill] sm:$0xff] %v5803_v41  ;;  %1910 = vmatmul.mubr.f32.gmra.mrb[28].mxu1 %v6541_v59  ;;  %4038 = vmatprep.subr.bf16.mxu1 %v6545_v52  ;;  %v1951_v59 = vand.u32 4294901760, %v5819_v1  ;;  %v5831_v54 = vsub.f32 %v1737_v25, %v5821_v4  ;;  %v6548_v52 = vld [vmem:[#allocation31_spill] sm:$0xff] }
 0x256   : > { %1915 = vmatprep.mubr.f32.mxu1 %v6510_v17  ;;  %v1931_v21 = vand.u32 4294901760, %v1930_v30  ;;  %v1942_v41 = vand.u32 4294901760, %v1941_v26  ;;  %v6588_v26 = vld [vmem:[#allocation34_spill] sm:$0xff] }
 0x257   : > { %v1962_v30 = vand.u32 4294901760, %v5831_v54 }
 0x258   : > { %4040 = vmatpush1.bf16.msra.mxu1 %v6546_v35 }
 0x259   : > { %1921 = vmatmul.mubr.f32.gmra.mrb[30].mxu1 %v1920_v42  ;;  %4042 = vmatprep.subr.bf16.mxu1 %v6547_v12  ;;  %v1952_v42 = vsub.f32 %v5819_v1, %v1951_v59  ;;  %v1963_v35 = vsub.f32 %v5831_v54, %v1962_v30  ;;  %v6589_v12 = vld [vmem:[#allocation33_spill] sm:$0xff] }
 0x25a   : > { %1926 = vmatprep.mubr.f32.mxu1 %v6510_v17 }
 0x25b   : > { %v1953_v25 = vand.u32 4294901760, %v1952_v42 }
 0x25c   : > { %4044 = vmatpush1.bf16.msra.mxu1 %v6548_v52  ;;  %v6591_v52 = vld [vmem:[#allocation35_spill] sm:$0xff] }
 0x25d   : > { %1932 = vmatmul.mubr.f32.gmra.mrb[32].mxu1 %v1931_v21  ;;  %4046 = vmatprep.subr.bf16.mxu1 %v5633_v13  ;;  %v1964_v21 = vand.u32 4294901760, %v1963_v35  ;;  %v6549_v13 = vpack.c.bf16 %v5394_v51, %v5369_v63  ;;  %v6555_v51 = vpack.c.bf16 %v5472_v9, %v5454_v28  ;;  %v6557_v63 = vpack.c.bf16 %v5470_v38, %v5448_v32  ;;  %v6565_v32 = vld [vmem:[#allocation13_spill] sm:$0xff]  ;;  %v6593_v35 = vld [vmem:[#allocation36_spill] sm:$0xff] }
 0x25e   : > { %1937 = vmatprep.mubr.f32.mxu1 %v6510_v17  ;;  %v6563_v9 = vpack.c.bf16 %v5546_v37, %v5524_v50  ;;  %v6566_v28 = vpack.c.bf16 %v5584_v3, %v5562_v56  ;;  %v6567_v38 = vpack.c.bf16 %v5624_v11, %v5605_v10  ;;  %v6573_v37 = vld [vmem:[#allocation15_spill] sm:$0xff]  ;;  %v6574_v50 = vld [vmem:[#allocation18_spill] sm:$0xff]  ;;  %v6576_v11 = vld [vmem:[#allocation17_spill] sm:$0xff] }
 0x25f   : > { %v6577_v3 = vld [vmem:[#allocation20_spill] sm:$0xff]  ;;  %v6582_v10 = vld [vmem:[#allocation21_spill] sm:$0xff] }
 0x260   : > { %4048 = vmatpush1.bf16.msra.mxu1 %v5641_v40  ;;  %v6550_v40 = vld [vmem:[#allocation3_spill] sm:$0xff]  ;;  %v6578_v56 = vld [vmem:[#allocation8_spill] sm:$0xff] }
 0x261   : > { %1943 = vmatmul.mubr.f32.gmra.mrb[34].mxu1 %v1942_v41  ;;  %4050 = vmatprep.subr.bf16.mxu1 %v5668_v43  ;;  %v6551_v43 = vpack.c.bf16 %v5392_v27, %v5365_v0  ;;  %v6556_v0 = vld [vmem:[#allocation5_spill] sm:$0xff]  ;;  %v6587_v41 = vld [vmem:[#allocation32_spill] sm:$0xff] }
 0x262   : > { %1948 = vmatprep.mubr.f32.mxu1 %v6510_v17  ;;  %v6559_v27 = vld [vmem:[#allocation9_spill] sm:$0xff] }
 0x264   : > { %4052 = vmatpush1.bf16.msra.mxu1 %v5662_v19  ;;  %v6552_v19 = vpack.c.bf16 %v5432_v48, %v5414_v33  ;;  %v6558_v48 = vpack.c.bf16 %v5510_v49, %v5491_v44  ;;  %v6561_v33 = vpack.c.bf16 %v5548_v62, %v5529_v61  ;;  %v6564_v49 = vpack.c.bf16 %v5586_v7, %v5567_v5  ;;  %v6571_v44 = vld [vmem:[#allocation16_spill] sm:$0xff]  ;;  %v6572_v7 = vld [vmem:[#allocation6_spill] sm:$0xff]  ;;  %v6575_v61 = vld [vmem:[#allocation7_spill] sm:$0xff] }
 0x265   : > { %1954 = vmatmul.mubr.f32.gmra.mrb[36].mxu1 %v1953_v25  ;;  %4054 = vmatprep.subr.bf16.mxu1 %v4053_v36  ;;  %v6553_v36 = vld [vmem:[#allocation4_spill] sm:$0xff]  ;;  %v6568_v62 = vpack.c.bf16 %v5622_v14, %v5600_v2  ;;  %v6579_v5 = vld [vmem:[#allocation19_spill] sm:$0xff]  ;;  %v6580_v14 = vld [vmem:[#allocation22_spill] sm:$0xff]  ;;  %v6590_v42 = vand.u32 4294901760, %v6572_v7  ;;  %v6592_v25 = vand.u32 4294901760, %v6575_v61 }
 0x266   : > { %1959 = vmatprep.mubr.f32.mxu1 %v6510_v17  ;;  %v6581_v2 = vld [vmem:[#allocation10_spill] sm:$0xff] }
 0x268   : > { %4056 = vmatpush1.bf16.msra.mxu1 %v4055_v34  ;;  %v6554_v34 = vpack.c.bf16 %v5430_v22, %v5409_v23  ;;  %v6560_v23 = vpack.c.bf16 %v5508_v53, %v5486_v45  ;;  %v6562_v22 = vld [vmem:[#allocation12_spill] sm:$0xff]  ;;  %v6569_v53 = vpack.c.bf16 %v5664_v18, %v5643_v60  ;;  %v6570_v45 = vpack.c.bf16 %v5660_v47, %v5638_v24  ;;  %v6583_v18 = vld [vmem:[#allocation25_spill] sm:$0xff] }
 0x269   : > { %1965 = vmatmul.mubr.f32.gmra.mrb[38].mxu1 %v1964_v21  ;;  %4058 = vmatprep.subr.bf16.mxu1 %v6549_v13  ;;  %v6584_v24 = vld [vmem:[#allocation24_spill] sm:$0xff]  ;;  %v6585_v60 = vld [vmem:[#allocation29_spill] sm:$0xff]  ;;  %v6597_v13 = vand.u32 4294901760, %v6581_v2 }
 0x26a   : > { %2195 = vmatprep.mubr.f32.mxu1 %v6510_v17  ;;  %v6586_v47 = vld [vmem:[#allocation28_spill] sm:$0xff]  ;;  %v6594_v21 = vld [vmem:[#allocation37_spill] sm:$0xff] }
 0x26d   : > { %2197 = vmatmul.mubr.f32.vlgmr.msra.gmra.mrb[24].mxu1 %v6550_v40 }
 0x26e   : > { %4060 = vmatpush1.bf16.msra.mxu1 %v6551_v43  ;;  %2202 = vmatprep.mubr.f32.mxu1 %v6510_v17  ;;  %v6598_v43 = vld [vmem:[#allocation39_spill] sm:$0xff] }
 0x26f   : > { %4062 = vmatprep.subr.bf16.mxu1 %v6552_v19  ;;  %v6599_v19 = vld [vmem:[#allocation40_spill] sm:$0xff] }
 0x271   : > { %2204 = vmatmul.mubr.f32.gmra.mrb[26].mxu1 %v6553_v36 }
 0x272   : > { %4064 = vmatpush1.bf16.msra.mxu1 %v6554_v34  ;;  %2209 = vmatprep.mubr.f32.mxu1 %v6510_v17  ;;  %v6600_v34 = vand.u32 4294901760, %v5380_v39 }
 0x273   : > { %4066 = vmatprep.subr.bf16.mxu1 %v6555_v51  ;;  %v6601_v51 = vld [vmem:[#allocation41_spill] sm:$0xff] }
 0x275   : > { %2211 = vmatmul.mubr.f32.gmra.mrb[28].mxu1 %v6556_v0 }
 0x276   : > { %4068 = vmatpush1.bf16.msra.mxu1 %v6557_v63  ;;  %2216 = vmatprep.mubr.f32.mxu1 %v6510_v17 }
 0x277   : > { %4070 = vmatprep.subr.bf16.mxu1 %v6558_v48 }
 0x279   : > { %2218 = vmatmul.mubr.f32.gmra.mrb[30].mxu1 %v6559_v27 }
 0x27a   : > { %4072 = vmatpush1.bf16.msra.mxu1 %v6560_v23  ;;  %2223 = vmatprep.mubr.f32.mxu1 %v6510_v17 }
 0x27b   : > { %4074 = vmatprep.subr.bf16.mxu1 %v6561_v33 }
 0x27d   : > { %2225 = vmatmul.mubr.f32.gmra.mrb[32].mxu1 %v6562_v22 }
 0x27e   : > { %4076 = vmatpush1.bf16.msra.mxu1 %v6563_v9  ;;  %2230 = vmatprep.mubr.f32.mxu1 %v6510_v17 }
 0x27f   : > { %4078 = vmatprep.subr.bf16.mxu1 %v6564_v49  ;;  %v3003_v49 = vld [vmem:[%s6367_s5 + $0x18] sm:$0xff] }
 0x281   : > { %2232 = vmatmul.mubr.f32.gmra.mrb[34].mxu1 %v6565_v32 }
 0x282   : > { %4080 = vmatpush1.bf16.msra.mxu1 %v6566_v28  ;;  %2237 = vmatprep.mubr.f32.mxu1 %v6510_v17 }
 0x283   : > { %4082 = vmatprep.subr.bf16.mxu1 %v6567_v38 }
 0x285   : > { %2239 = vmatmul.mubr.f32.gmra.mrb[36].mxu1 %v5791_v55 }
 0x286   : > { %4084 = vmatpush1.bf16.msra.mxu1 %v6568_v62  ;;  %2244 = vmatprep.mubr.f32.mxu1 %v6510_v17 }
 0x287   : > { %4086 = vmatprep.subr.bf16.mxu1 %v6569_v53 }
 0x289   : > { %2246 = vmatmul.mubr.f32.gmra.mrb[38].mxu1 %v5821_v4 }
 0x28a   : > { %4088 = vmatpush1.bf16.msra.mxu1 %v6570_v45  ;;  %2380 = vmatprep.mubr.f32.mxu1 %v6510_v17 }
 0x28b   : > { %4090 = vmatprep.subr.bf16.mxu1 %v6571_v44 }
 0x28d   : > { %2383 = vmatmul.mubr.f32.vlgmr.msra.gmra.mrb[24].mxu1 %v6572_v7 }
 0x28e   : > { %4092 = vmatpush1.bf16.msra.mxu1 %v6573_v37  ;;  %2388 = vmatprep.mubr.f32.mxu1 %v6510_v17 }
 0x28f   : > { %4094 = vmatprep.subr.bf16.mxu1 %v6574_v50 }
 0x291   : > { %2391 = vmatmul.mubr.f32.gmra.mrb[26].mxu1 %v6575_v61 }
 0x292   : > { %4096 = vmatpush1.bf16.msra.mxu1 %v6576_v11  ;;  %2396 = vmatprep.mubr.f32.mxu1 %v6510_v17 }
 0x293   : > { %4098 = vmatprep.subr.bf16.mxu1 %v6577_v3 }
 0x295   : > { %2399 = vmatmul.mubr.f32.gmra.mrb[28].mxu1 %v6578_v56 }
 0x296   : > { %4100 = vmatpush1.bf16.msra.mxu1 %v6579_v5  ;;  %2404 = vmatprep.mubr.f32.mxu1 %v6510_v17 }
 0x297   : > { %4102 = vmatprep.subr.bf16.mxu1 %v6580_v14 }
 0x299   : > { %2407 = vmatmul.mubr.f32.gmra.mrb[30].mxu1 %v6581_v2 }
 0x29a   : > { %4104 = vmatpush1.bf16.msra.mxu1 %v6582_v10  ;;  %2412 = vmatprep.mubr.f32.mxu1 %v6510_v17 }
 0x29b   : > { %4106 = vmatprep.subr.bf16.mxu1 %v6583_v18 }
 0x29d   : > { %2415 = vmatmul.mubr.f32.gmra.mrb[32].mxu1 %v5380_v39  ;;  %v6603_v39 = vld [vmem:[#allocation43_spill] sm:$0xff] }
 0x29e   : > { %4108 = vmatpush1.bf16.msra.mxu1 %v6584_v24  ;;  %2420 = vmatprep.mubr.f32.mxu1 %v6510_v17 }
 0x29f   : > { %4110 = vmatprep.subr.bf16.mxu1 %v6585_v60 }
 0x2a1   : > { %2423 = vmatmul.mubr.f32.gmra.mrb[34].mxu1 %v6543_v6 }
 0x2a2   : > { %4112 = vmatpush1.bf16.msra.mxu1 %v6586_v47  ;;  %2428 = vmatprep.mubr.f32.mxu1 %v6510_v17 }
 0x2a3   : > { %4114 = vmatprep.subr.bf16.mxu1 %v5626_v46 }
 0x2a5   : > { %2431 = vmatmul.mubr.f32.gmra.mrb[36].mxu1 %v5819_v1  ;;  %v3002_v1 = vld [vmem:[%s6367_s5 + $0x10] sm:$0xff] }
 0x2a6   : > { %4116 = vmatpush1.bf16.msra.mxu1 %v6587_v41  ;;  %2436 = vmatprep.mubr.f32.mxu1 %v6510_v17 }
 0x2a7   : > { %4118 = vmatprep.subr.bf16.mxu1 %v6588_v26 }
 0x2a9   : > { %2439 = vmatmul.mubr.f32.gmra.mrb[38].mxu1 %v5831_v54 }
 0x2aa   : > { %4120 = vmatpush1.bf16.msra.mxu1 %v6589_v12  ;;  %2541 = vmatprep.mubr.f32.mxu1 %v6510_v17 }
 0x2ab   : > { %4122 = vmatprep.subr.bf16.mxu1 %v5706_v16  ;;  %v6595_v16 = vand.u32 4294901760, %v6578_v56 }
 0x2ad   : > { %2545 = vmatmul.mubr.f32.vlgmr.msra.gmra.mrb[24].mxu1 %v6590_v42 }
 0x2ae   : > { %4124 = vmatpush1.bf16.msra.mxu1 %v5714_v29  ;;  %2550 = vmatprep.mubr.f32.mxu1 %v6510_v17  ;;  %v6596_v29 = vld [vmem:[#allocation38_spill] sm:$0xff] }
 0x2af   : > { %4126 = vmatprep.subr.bf16.mxu1 %v6591_v52 }
 0x2b1   : > { %2554 = vmatmul.mubr.f32.gmra.mrb[26].mxu1 %v6592_v25 }
 0x2b2   : > { %4128 = vmatpush1.bf16.msra.mxu1 %v6593_v35  ;;  %2559 = vmatprep.mubr.f32.mxu1 %v6510_v17 }
 0x2b3   : > { %4130 = vmatprep.subr.bf16.mxu1 %v6594_v21 }
 0x2b5   : > { %2563 = vmatmul.mubr.f32.gmra.mrb[28].mxu1 %v6595_v16 }
 0x2b6   : > { %4132 = vmatpush1.bf16.msra.mxu1 %v5744_v15  ;;  %2568 = vmatprep.mubr.f32.mxu1 %v6510_v17  ;;  %v6602_v15 = vld [vmem:[#allocation42_spill] sm:$0xff] }
 0x2b7   : > { %4134 = vmatprep.subr.bf16.mxu1 %v6596_v29 }
 0x2b9   : > { %2572 = vmatmul.mubr.f32.gmra.mrb[30].mxu1 %v6597_v13 }
 0x2ba   : > { %4136 = vmatpush1.bf16.msra.mxu1 %v6598_v43  ;;  %2577 = vmatprep.mubr.f32.mxu1 %v6510_v17 }
 0x2bb   : > { %4138 = vmatprep.subr.bf16.mxu1 %v6599_v19 }
 0x2bd   : > { %2581 = vmatmul.mubr.f32.gmra.mrb[32].mxu1 %v6600_v34 }
 0x2be   : > { %4140 = vmatpush1.bf16.msra.mxu1 %v6601_v51  ;;  %2586 = vmatprep.mubr.f32.mxu1 %v6510_v17 }
 0x2bf   : > { %4142 = vmatprep.subr.bf16.mxu1 %v6602_v15 }
 0x2c1   : > { %2590 = vmatmul.mubr.f32.gmra.mrb[34].mxu1 %v1940_v31 }
 0x2c2   : > { %4144 = vmatpush1.bf16.msra.mxu1 %v5781_v20  ;;  %2595 = vmatprep.mubr.f32.mxu1 %v6510_v17 }
 0x2c3   : > { %4146 = vmatprep.subr.bf16.mxu1 %v5787_v57 }
 0x2c5   : > { %2599 = vmatmul.mubr.f32.gmra.mrb[36].mxu1 %v1951_v59 }
 0x2c6   : > { %4148 = vmatpush1.bf16.msra.mxu1 %v5797_v58  ;;  %2604 = vmatprep.mubr.f32.mxu1 %v6510_v17  ;;  %v3001_v58 = vld [vmem:[%s6367_s5 + $0x8] sm:$0xff] }
 0x2c7   : > { %4150 = vmatprep.subr.bf16.mxu1 %v5799_v8  ;;  %v3033_v57 = vsel %vm3028_vm1, %v3001_v58, 0 }
 0x2c9   : > { %2608 = vmatmul.mubr.f32.gmra.mrb[38].mxu1 %v1962_v30 }
 0x2ca   : > { %4152 = vmatpush1.bf16.msra.mxu1 %v6603_v39  ;;  %2774 = vmatprep.mubr.f32.mxu1 %v6510_v17 }
 0x2cb   : > { %4154 = vmatprep.subr.bf16.mxu1 %v6571_v44 }
 0x2cd   : > { %2776 = vmatmul.mubr.f32.vlgmr.msra.gmra.mrb[24].mxu1 %v6550_v40 }
 0x2ce   : > { %4156 = vmatpush1.bf16.msra.mxu1 %v6573_v37  ;;  %2781 = vmatprep.mubr.f32.mxu1 %v6510_v17  ;;  %v6078_v37 = vsel %vm3028_vm1, %v3003_v49, 0 }
 0x2cf   : > { %4158 = vmatprep.subr.bf16.mxu1 %v6574_v50 }
 0x2d1   : > { %2783 = vmatmul.mubr.f32.gmra.mrb[26].mxu1 %v6553_v36 }
 0x2d2   : > { %4160 = vmatpush1.bf16.msra.mxu1 %v6576_v11  ;;  %2788 = vmatprep.mubr.f32.mxu1 %v6510_v17 }
 0x2d3   : > { %4162 = vmatprep.subr.bf16.mxu1 %v6577_v3 }
 0x2d5   : > { %2790 = vmatmul.mubr.f32.gmra.mrb[28].mxu1 %v6556_v0 }
 0x2d6   : > { %4164 = vmatpush1.bf16.msra.mxu1 %v6579_v5  ;;  %2795 = vmatprep.mubr.f32.mxu1 %v6510_v17 }
 0x2d7   : > { %4166 = vmatprep.subr.bf16.mxu1 %v6580_v14 }
 0x2d9   : > { %2797 = vmatmul.mubr.f32.gmra.mrb[30].mxu1 %v6559_v27 }
 0x2da   : > { %4168 = vmatpush1.bf16.msra.mxu1 %v6582_v10  ;;  %2802 = vmatprep.mubr.f32.mxu1 %v6510_v17 }
 0x2db   : > { %4170 = vmatprep.subr.bf16.mxu1 %v6583_v18 }
 0x2dd   : > { %2804 = vmatmul.mubr.f32.gmra.mrb[32].mxu1 %v6562_v22 }
 0x2de   : > { %4172 = vmatpush1.bf16.msra.mxu1 %v6584_v24  ;;  %2809 = vmatprep.mubr.f32.mxu1 %v6510_v17 }
 0x2df   : > { %4174 = vmatprep.subr.bf16.mxu1 %v6585_v60 }
 0x2e1   : > { %2811 = vmatmul.mubr.f32.gmra.mrb[34].mxu1 %v6565_v32 }
 0x2e2   : > { %4176 = vmatpush1.bf16.msra.mxu1 %v6586_v47  ;;  %2816 = vmatprep.mubr.f32.mxu1 %v6510_v17 }
 0x2e3   : > { %4178 = vmatprep.subr.bf16.mxu1 %v5626_v46  ;;  %v3000_v46 = vld [vmem:[%s6367_s5] sm:$0xff] }
 0x2e4   : > { %v3030_v20 = vsel %vm3028_vm1, %v3000_v46, 0 }
 0x2e5   : > { %2818 = vmatmul.mubr.f32.gmra.mrb[36].mxu1 %v5791_v55  ;;  %v6044_v8 = vand.u32 4294901760, %v3030_v20 }
 0x2e6   : > { %4180 = vmatpush1.bf16.msra.mxu1 %v6587_v41  ;;  %2823 = vmatprep.mubr.f32.mxu1 %v6510_v17 }
 0x2e7   : > { %4182 = vmatprep.subr.bf16.mxu1 %v6588_v26  ;;  %v6049_v6 = vsub.f32 %v3030_v20, %v6044_v8  ;;  %v6090_v26 = vand.u32 4294901760, %v6078_v37 }
 0x2e9   : > { %2825 = vmatmul.mubr.f32.gmra.mrb[38].mxu1 %v5821_v4  ;;  %v6453_v54 = vand.u32 4294901760, %v6049_v6 }
 0x2ea   : > { %4184 = vmatpush1.bf16.msra.mxu1 %v6589_v12  ;;  %2927 = vmatprep.mubr.f32.mxu1 %v6510_v17 }
 0x2ed   : > { %2929 = vmatmul.mubr.f32.vlgmr.msra.gmra.mrb[24].mxu1 %v6550_v40 }
 0x2ee   : > { %2934 = vmatprep.mubr.f32.mxu1 %v6510_v17 }
 0x2f1   : > { %2936 = vmatmul.mubr.f32.gmra.mrb[26].mxu1 %v6553_v36 }
 0x2f2   : > { %2941 = vmatprep.mubr.f32.mxu1 %v6510_v17 }
 0x2f5   : > { %2943 = vmatmul.mubr.f32.gmra.mrb[28].mxu1 %v6556_v0  ;;  %v3036_v0 = vsel %vm3028_vm1, %v3002_v1, 0 }
 0x2f6   : > { %2948 = vmatprep.mubr.f32.mxu1 %v6510_v17  ;;  %v6065_v9 = vand.u32 4294901760, %v3036_v0 }
 0x2f8   : > { %v6084_v5 = vsub.f32 %v3036_v0, %v6065_v9 }
 0x2f9   : > { %2950 = vmatmul.mubr.f32.gmra.mrb[30].mxu1 %v6559_v27  ;;  %v1754_v27 = vpop.permute.xlu1 %1753 }
 0x2fa   : > { %2955 = vmatprep.mubr.f32.mxu1 %v6510_v17 }
 0x2fd   : > { %2957 = vmatmul.mubr.f32.gmra.mrb[32].mxu1 %v6562_v22  ;;  %v6063_v22 = vsub.f32 %v6049_v6, %v6453_v54  ;;  %v1764_v35 = vpop.permute.xlu1 %1763 }
 0x2fe   : > { %2962 = vmatprep.mubr.f32.mxu1 %v6510_v17 }
 0x301   : > { %2964 = vmatmul.mubr.f32.gmra.mrb[34].mxu1 %v6565_v32 }
 0x302   : > { %2969 = vmatprep.mubr.f32.mxu1 %v6510_v17 }
 0x305   : > { %2971 = vmatmul.mubr.f32.gmra.mrb[36].mxu1 %v5791_v55  ;;  %v6046_v55 = vand.u32 4294901760, %v3033_v57 }
 0x306   : > { %2976 = vmatprep.mubr.f32.mxu1 %v6510_v17 }
 0x307   : > { %v6052_v31 = vsub.f32 %v3033_v57, %v6046_v55 }
 0x309   : > { %2978 = vmatmul.mubr.f32.gmra.mrb[38].mxu1 %v5821_v4  ;;  %v1749_v4 = vpop.permute.xlu0 %1748  ;;  %v6452_v36 = vand.u32 4294901760, %v6052_v31 }
 0x30a   : > { %3121 = vmatprep.mubr.f32.mxu1 %v6510_v17 }
 0x30b   : > { %v6073_v62 = vsub.f32 %v6052_v31, %v6452_v36 }
 0x30d   : > { %v1759_v50 = vpop.permute.xlu0 %1758 }
 0x3c0   : > { %v2930_v59 = vpop.f32.mrb[24].mxu1 }
 0x3c1   : > { %v4339_v30 = vadd.f32 %v2930_v59, %v1749_v4  ;;  %v2932_v40 = vpop.f32.mrb[25].mxu1 }
 0x3c2   : > { %v4340_v63 = vadd.f32 %v2932_v40, %v1749_v4  ;;  %v1769_v40 = vpop.permute.xlu0 %1768 }
 0x3c3   : > { %v2984_v48 = vmax.f32 %v4339_v30, 0.0 }
 0x3c4   : > { %v2985_v23 = vmax.f32 %v4340_v63, 0.0  ;;  %v2937_v33 = vpop.f32.mrb[26].mxu1 }
 0x3c5   : > { %v3043_v32 = vand.u32 4294901760, %v2984_v48  ;;  %v4341_v28 = vadd.f32 %v2937_v33, %v1754_v27  ;;  %v2939_v38 = vpop.f32.mrb[27].mxu1 }
 0x3c6   : > { %v3041_v53 = vand.u32 4294901760, %v2985_v23  ;;  %v4342_v45 = vadd.f32 %v2939_v38, %v1754_v27 }
 0x3c7   : > { %v6075_v44 = vsub.f32 %v2984_v48, %v3043_v32  ;;  %v2986_v7 = vmax.f32 %v4341_v28, 0.0 }
 0x3c8   : > { %v6080_v61 = vsub.f32 %v2985_v23, %v3041_v53  ;;  %v2987_v11 = vmax.f32 %v4342_v45, 0.0  ;;  %v2944_v3 = vpop.f32.mrb[28].mxu1 }
 0x3c9   : > { %v3174_v14 = vand.u32 4294901760, %v6075_v44  ;;  %v3047_v2 = vand.u32 4294901760, %v2986_v7  ;;  %v4343_v10 = vadd.f32 %v2944_v3, %v1759_v50  ;;  %v2946_v18 = vpop.f32.mrb[29].mxu1 }
 0x3ca   : > { %v3168_v60 = vand.u32 4294901760, %v6080_v61  ;;  %v3045_v47 = vand.u32 4294901760, %v2987_v11  ;;  %v4344_v41 = vadd.f32 %v2946_v18, %v1759_v50  ;;  %v1774_v18 = vpop.permute.xlu1 %1773 }
 0x3cb   : > { %v3175_v12 = vsub.f32 %v6075_v44, %v3174_v14  ;;  %v6095_v42 = vpack.c.bf16 %v3047_v2, %v3043_v32  ;;  %v6097_v52 = vsub.f32 %v2986_v7, %v3047_v2  ;;  %v2988_v25 = vmax.f32 %v4343_v10, 0.0 }
 0x3cc   : > { %v6099_v21 = vsub.f32 %v2987_v11, %v3045_v47  ;;  %v2989_v16 = vmax.f32 %v4344_v41, 0.0  ;;  %v2951_v29 = vpop.f32.mrb[30].mxu1  ;;  %v6101_v13 = vpack.c.bf16 %v3045_v47, %v3041_v53  ;;  %v3169_v43 = vsub.f32 %v6080_v61, %v3168_v60 }
 0x3cd   : > { %v3176_v19 = vand.u32 4294901760, %v3175_v12  ;;  %v3186_v34 = vand.u32 4294901760, %v6097_v52  ;;  %v3051_v51 = vand.u32 4294901760, %v2988_v25  ;;  %v4345_v15 = vadd.f32 %v2951_v29, %v1764_v35  ;;  %v2953_v39 = vpop.f32.mrb[31].mxu1 }
 0x3ce   : > { %v3180_v46 = vand.u32 4294901760, %v6099_v21  ;;  %v3049_v58 = vand.u32 4294901760, %v2989_v16  ;;  %v4346_v20 = vadd.f32 %v2953_v39, %v1764_v35  ;;  %4186 = vmatprep.subr.bf16.mxu1 %v6101_v13  ;;  %v3170_v57 = vand.u32 4294901760, %v3169_v43 }
 0x3cf   : > { %v3187_v1 = vsub.f32 %v6097_v52, %v3186_v34  ;;  %v6112_v4 = vsub.f32 %v2988_v25, %v3051_v51  ;;  %v2990_v59 = vmax.f32 %v4345_v15, 0.0  ;;  %4188 = vmatpush1.bf16.msra.mxu1 %v6095_v42 }
 0x3d0   : > { %v6117_v0 = vsub.f32 %v2989_v16, %v3049_v58  ;;  %v2991_v63 = vmax.f32 %v4346_v20, 0.0  ;;  %v2958_v48 = vpop.f32.mrb[32].mxu1  ;;  %v3181_v27 = vsub.f32 %v6099_v21, %v3180_v46 }
 0x3d1   : > { %v3188_v33 = vand.u32 4294901760, %v3187_v1  ;;  %v6457_v49 = vand.u32 4294901760, %v6112_v4  ;;  %v3055_v32 = vand.u32 4294901760, %v2990_v59  ;;  %v4347_v28 = vadd.f32 %v2958_v48, %v1769_v40  ;;  %v2960_v38 = vpop.f32.mrb[33].mxu1  ;;  %v1779_v48 = vpop.permute.xlu0 %1778 }
 0x3d2   : > { %v6459_v53 = vand.u32 4294901760, %v6117_v0  ;;  %v3053_v45 = vand.u32 4294901760, %v2991_v63  ;;  %v4348_v7 = vadd.f32 %v2960_v38, %v1769_v40  ;;  %v3182_v50 = vand.u32 4294901760, %v3181_v27 }
 0x3d3   : > { %v6129_v11 = vsub.f32 %v6112_v4, %v6457_v49  ;;  %v6131_v3 = vpack.c.bf16 %v3055_v32, %v3051_v51  ;;  %v6133_v2 = vsub.f32 %v2990_v59, %v3055_v32  ;;  %v2992_v10 = vmax.f32 %v4347_v28, 0.0 }
 0x3d4   : > { %v6135_v47 = vsub.f32 %v2991_v63, %v3053_v45  ;;  %v2993_v41 = vmax.f32 %v4348_v7, 0.0  ;;  %v2965_v12 = vpop.f32.mrb[34].mxu1  ;;  %v6137_v25 = vpack.c.bf16 %v3053_v45, %v3049_v58  ;;  %v6139_v35 = vpack.c.bf16 %v3182_v50, %v3170_v57 }
 0x3d5   : > { %v3200_v16 = vand.u32 4294901760, %v6129_v11  ;;  %v6456_v29 = vand.u32 4294901760, %v6133_v2  ;;  %v3059_v43 = vand.u32 4294901760, %v2992_v10  ;;  %v4349_v15 = vadd.f32 %v2965_v12, %v1774_v18  ;;  %v2967_v51 = vpop.f32.mrb[35].mxu1 }
 0x3d6   : > { %v6458_v39 = vand.u32 4294901760, %v6135_v47  ;;  %v3057_v20 = vand.u32 4294901760, %v2993_v41  ;;  %v4350_v1 = vadd.f32 %v2967_v51, %v1774_v18  ;;  %4190 = vmatprep.subr.bf16.mxu1 %v6137_v25  ;;  %v6145_v59 = vpack.c.bf16 %v3188_v33, %v3176_v19 }
 0x3d7   : > { %v3211_v58 = vsub.f32 %v6133_v2, %v6456_v29  ;;  %v6150_v57 = vsub.f32 %v2992_v10, %v3059_v43  ;;  %v2994_v40 = vmax.f32 %v4349_v15, 0.0  ;;  %4192 = vmatpush1.bf16.msra.mxu1 %v6131_v3  ;;  %v3193_v63 = vsub.f32 %v6117_v0, %v6459_v53 }
 0x3d8   : > { %v6156_v27 = vsub.f32 %v2993_v41, %v3057_v20  ;;  %v2995_v32 = vmax.f32 %v4350_v1, 0.0  ;;  %v2972_v28 = vpop.f32.mrb[36].mxu1  ;;  %v3205_v19 = vsub.f32 %v6135_v47, %v6458_v39 }
 0x3d9   : > { %v3212_v38 = vand.u32 4294901760, %v3211_v58  ;;  %v6454_v45 = vand.u32 4294901760, %v6150_v57  ;;  %v3063_v7 = vand.u32 4294901760, %v2994_v40  ;;  %v4351_v50 = vadd.f32 %v2972_v28, %v1779_v48  ;;  %v2974_v11 = vpop.f32.mrb[37].mxu1  ;;  %v1784_v58 = vpop.permute.xlu1 %1783 }
 0x3da   : > { %v6455_v10 = vand.u32 4294901760, %v6156_v27  ;;  %v3061_v18 = vand.u32 4294901760, %v2995_v32  ;;  %v4352_v41 = vadd.f32 %v2974_v11, %v1779_v48  ;;  %v3194_v12 = vand.u32 4294901760, %v3193_v63 }
 0x3db   : > { %v3223_v15 = vsub.f32 %v6150_v57, %v6454_v45  ;;  %v6168_v51 = vpack.c.bf16 %v3063_v7, %v3059_v43  ;;  %v6170_v1 = vsub.f32 %v2994_v40, %v3063_v7  ;;  %v2996_v36 = vmax.f32 %v4351_v50, 0.0 }
 0x3dc   : > { %v6172_v54 = vsub.f32 %v2995_v32, %v3061_v18  ;;  %v2997_v33 = vmax.f32 %v4352_v41, 0.0  ;;  %v2979_v28 = vpop.f32.mrb[38].mxu1  ;;  %v6174_v23 = vpack.c.bf16 %v3061_v18, %v3057_v20  ;;  %v3206_v30 = vand.u32 4294901760, %v3205_v19 }
 0x3dd   : > { %v3224_v24 = vand.u32 4294901760, %v3223_v15  ;;  %v3234_v63 = vand.u32 4294901760, %v6170_v1  ;;  %v3067_v48 = vand.u32 4294901760, %v2996_v36  ;;  %v4353_v11 = vadd.f32 %v2979_v28, %v1784_v58  ;;  %v2981_v56 = vpop.f32.mrb[39].mxu1 }
 0x3de   : > { %v3228_v43 = vand.u32 4294901760, %v6172_v54  ;;  %v3065_v45 = vand.u32 4294901760, %v2997_v33  ;;  %v4354_v40 = vadd.f32 %v2981_v56, %v1784_v58  ;;  %4194 = vmatprep.subr.bf16.mxu1 %v6174_v23  ;;  %v4205_v7 = vpack.c.bf16 %v3206_v30, %v3194_v12 }
 0x3df   : > { %v3235_v32 = vsub.f32 %v6170_v1, %v3234_v63  ;;  %v6180_v50 = vsub.f32 %v2996_v36, %v3067_v48  ;;  %v2998_v20 = vmax.f32 %v4353_v11, 0.0  ;;  %4196 = vmatpush1.bf16.msra.mxu1 %v6168_v51  ;;  %v4207_v19 = vpack.c.bf16 %v3212_v38, %v3200_v16 }
 0x3e0   : > { %v6183_v18 = vsub.f32 %v2997_v33, %v3065_v45  ;;  %v2999_v41 = vmax.f32 %v4354_v40, 0.0  ;;  %v3217_v15 = vsub.f32 %v6156_v27, %v6455_v10  ;;  %v3229_v56 = vsub.f32 %v6172_v54, %v3228_v43 }
 0x3e1   : > { %v3236_v58 = vand.u32 4294901760, %v3235_v32  ;;  %v3246_v30 = vand.u32 4294901760, %v6180_v50  ;;  %v3071_v12 = vand.u32 4294901760, %v2998_v20  ;;  %v3146_v10 = vand.u32 4294901760, %v6084_v5 }
 0x3e2   : > { %v3240_v28 = vand.u32 4294901760, %v6183_v18  ;;  %v3069_v11 = vand.u32 4294901760, %v2999_v41  ;;  %v3218_v16 = vand.u32 4294901760, %v3217_v15  ;;  %v3230_v33 = vand.u32 4294901760, %v3229_v56 }
 0x3e3   : > { %v6193_v38 = vpack.c.bf16 %v3071_v12, %v3067_v48  ;;  %v6195_v40 = vsub.f32 %v2998_v20, %v3071_v12  ;;  %v4211_v29 = vpack.c.bf16 %v3236_v58, %v3224_v24  ;;  %v6204_v36 = vsub.f32 %v6078_v37, %v6090_v26 }
 0x3e4   : > { %v6198_v49 = vsub.f32 %v2999_v41, %v3069_v11  ;;  %v6200_v32 = vpack.c.bf16 %v3069_v11, %v3065_v45  ;;  %v4209_v39 = vpack.c.bf16 %v3230_v33, %v3218_v16  ;;  %v3247_v53 = vsub.f32 %v6180_v50, %v3246_v30 }
 0x3e5   : > { %v3258_v15 = vand.u32 4294901760, %v6195_v40  ;;  %v4225_v48 = vpack.c.bf16 %v6172_v54, %v6156_v27  ;;  %v4227_v20 = vpack.c.bf16 %v6170_v1, %v6150_v57  ;;  %v3241_v45 = vsub.f32 %v6183_v18, %v3240_v28 }
 0x3e6   : > { %v3252_v24 = vand.u32 4294901760, %v6198_v49  ;;  %4198 = vmatprep.subr.bf16.mxu1 %v6200_v32  ;;  %v4229_v37 = vpack.c.bf16 %v6198_v49, %v6183_v18  ;;  %v4231_v41 = vpack.c.bf16 %v6195_v40, %v6180_v50  ;;  %v6225_v54 = vpack.c.bf16 %v3180_v46, %v3168_v60 }
 0x3e7   : > { %v3259_v56 = vsub.f32 %v6195_v40, %v3258_v15  ;;  %4200 = vmatpush1.bf16.msra.mxu1 %v6193_v38  ;;  %v6231_v1 = vpack.c.bf16 %v3186_v34, %v3174_v14  ;;  %v6604_v18 = vand.u32 4294901760, %v6117_v0  ;;  %v6605_v50 = vand.u32 4294901760, %v6135_v47 }
 0x3e8   : > { %4202 = vmatprep.subr.bf16.mxu1 %v6139_v35  ;;  %v3253_v12 = vsub.f32 %v6198_v49, %v3252_v24  ;;  %v6606_v11 = vand.u32 4294901760, %v6112_v4  ;;  %v6607_v60 = vand.u32 4294901760, %v6133_v2  ;;  %v6608_v16 = vand.u32 4294901760, %v6156_v27 }
 0x3e9   : > { %v6237_v58 = vpack.c.bf16 %v6605_v50, %v6604_v18  ;;  %v6609_v34 = vand.u32 4294901760, %v6150_v57  ;;  %v3248_v40 = vand.u32 4294901760, %v3247_v53  ;;  %v3260_v18 = vand.u32 4294901760, %v3259_v56 }
 0x3ea   : > { %v6245_v46 = vpack.c.bf16 %v6607_v60, %v6606_v11  ;;  %v6249_v14 = vpack.c.bf16 %v3228_v43, %v6608_v16  ;;  %v6255_v50 = vpack.c.bf16 %v3252_v24, %v3240_v28  ;;  %v6257_v35 = vpack.c.bf16 %v3258_v15, %v3246_v30 }
 0x3eb   : > { %v6253_v33 = vpack.c.bf16 %v3234_v63, %v6609_v34  ;;  %v6610_v49 = vand.u32 4294901760, %v6063_v22  ;;  %v3147_v11 = vsub.f32 %v6084_v5, %v3146_v10  ;;  %v3242_v27 = vand.u32 4294901760, %v3241_v45 }
 0x3ec   : > { %v3254_v43 = vand.u32 4294901760, %v3253_v12  ;;  %v3157_v60 = vand.u32 4294901760, %v6204_v36  ;;  %v4215_v53 = vpack.c.bf16 %v3260_v18, %v3248_v40  ;;  %v6611_v63 = vand.u32 4294901760, %v6073_v62 }
 0x3ed   : > { %3127 = vmatmul.mubr.f32.vlgmr.msra.gmra.mrb[40].mxu1 %v6610_v49  ;;  %v3148_v22 = vand.u32 4294901760, %v3147_v11  ;;  %v6612_v62 = vpack.c.bf16 %v6099_v21, %v6080_v61  ;;  %v6617_v61 = vand.u32 4294901760, %v6052_v31  ;;  %v3899_v18 = vlaneseq }
 0x3ee   : > { %4204 = vmatpush1.bf16.msra.mxu1 %v6145_v59  ;;  %3132 = vmatprep.mubr.f32.mxu1 %v6510_v17  ;;  %v4213_v57 = vpack.c.bf16 %v3254_v43, %v3242_v27  ;;  %v3158_v30 = vsub.f32 %v6204_v36, %v3157_v60  ;;  %v6613_v59 = vpack.c.bf16 %v6097_v52, %v6075_v44  ;;  %v6616_v44 = vand.u32 4294901760, %v6049_v6 }
 0x3ef   : > { %4206 = vmatprep.subr.bf16.mxu1 %v4205_v7  ;;  %v3900_v27 = vshrl.u32 %v3899_v18, 7  ;;  %vm3927_vm2 = vcmp.lt.s32.totalorder %v3899_v18, 256 }
 0x3f0   : > { %v3159_v28 = vand.u32 4294901760, %v3158_v30 }
 0x3f1   : > { %3138 = vmatmul.mubr.f32.gmra.mrb[42].mxu1 %v6611_v63  ;;  %v3901_v63 = vsub.s32 0, %v3900_v27 }
 0x3f2   : > { %4208 = vmatpush1.bf16.msra.mxu1 %v4207_v19  ;;  %3143 = vmatprep.mubr.f32.mxu1 %v6510_v17 }
 0x3f3   : > { %4210 = vmatprep.subr.bf16.mxu1 %v4209_v39  ;;  %v6615_v39 = vpack.c.bf16 %v6133_v2, %v6112_v4 }
 0x3f5   : > { %3149 = vmatmul.mubr.f32.gmra.mrb[44].mxu1 %v3148_v22 }
 0x3f6   : > { %4212 = vmatpush1.bf16.msra.mxu1 %v4211_v29  ;;  %3154 = vmatprep.mubr.f32.mxu1 %v6510_v17  ;;  %v6614_v29 = vpack.c.bf16 %v6135_v47, %v6117_v0 }
 0x3f7   : > { %4214 = vmatprep.subr.bf16.mxu1 %v4213_v57 }
 0x3f9   : > { %3160 = vmatmul.mubr.f32.gmra.mrb[46].mxu1 %v3159_v28 }
 0x3fa   : > { %4216 = vmatpush1.bf16.msra.mxu1 %v4215_v53  ;;  %3310 = vmatprep.mubr.f32.mxu1 %v6510_v17 }
 0x3fb   : > { %4218 = vmatprep.subr.bf16.mxu1 %v6612_v62 }
 0x3fd   : > { %3312 = vmatmul.mubr.f32.vlgmr.msra.gmra.mrb[40].mxu1 %v6044_v8 }
 0x3fe   : > { %4220 = vmatpush1.bf16.msra.mxu1 %v6613_v59  ;;  %3317 = vmatprep.mubr.f32.mxu1 %v6510_v17 }
 0x3ff   : > { %4222 = vmatprep.subr.bf16.mxu1 %v6614_v29 }
 0x401   : > { %3319 = vmatmul.mubr.f32.gmra.mrb[42].mxu1 %v6046_v55 }
 0x402   : > { %4224 = vmatpush1.bf16.msra.mxu1 %v6615_v39  ;;  %3324 = vmatprep.mubr.f32.mxu1 %v6510_v17 }
 0x403   : > { %4226 = vmatprep.subr.bf16.mxu1 %v4225_v48 }
 0x405   : > { %3326 = vmatmul.mubr.f32.gmra.mrb[44].mxu1 %v6065_v9 }
 0x406   : > { %4228 = vmatpush1.bf16.msra.mxu1 %v4227_v20  ;;  %3331 = vmatprep.mubr.f32.mxu1 %v6510_v17 }
 0x407   : > { %4230 = vmatprep.subr.bf16.mxu1 %v4229_v37 }
 0x409   : > { %3333 = vmatmul.mubr.f32.gmra.mrb[46].mxu1 %v6090_v26 }
 0x40a   : > { %4232 = vmatpush1.bf16.msra.mxu1 %v4231_v41  ;;  %3435 = vmatprep.mubr.f32.mxu1 %v6510_v17 }
 0x40b   : > { %4234 = vmatprep.subr.bf16.mxu1 %v6101_v13 }
 0x40d   : > { %3438 = vmatmul.mubr.f32.vlgmr.msra.gmra.mrb[40].mxu1 %v6049_v6  ;;  %v3011_v6 = vpop.permute.xlu0 %3010 }
 0x40e   : > { %4236 = vmatpush1.bf16.msra.mxu1 %v6095_v42  ;;  %3443 = vmatprep.mubr.f32.mxu1 %v6510_v17 }
 0x40f   : > { %4238 = vmatprep.subr.bf16.mxu1 %v6137_v25 }
 0x411   : > { %3446 = vmatmul.mubr.f32.gmra.mrb[42].mxu1 %v6052_v31  ;;  %v3016_v31 = vpop.permute.xlu1 %3015 }
 0x412   : > { %4240 = vmatpush1.bf16.msra.mxu1 %v6131_v3  ;;  %3451 = vmatprep.mubr.f32.mxu1 %v6510_v17 }
 0x413   : > { %4242 = vmatprep.subr.bf16.mxu1 %v6174_v23 }
 0x415   : > { %3454 = vmatmul.mubr.f32.gmra.mrb[44].mxu1 %v6084_v5  ;;  %v3021_v5 = vpop.permute.xlu0 %3020 }
 0x416   : > { %4244 = vmatpush1.bf16.msra.mxu1 %v6168_v51  ;;  %3459 = vmatprep.mubr.f32.mxu1 %v6510_v17 }
 0x417   : > { %4246 = vmatprep.subr.bf16.mxu1 %v6200_v32 }
 0x419   : > { %3462 = vmatmul.mubr.f32.gmra.mrb[46].mxu1 %v6204_v36 }
 0x41a   : > { %4248 = vmatpush1.bf16.msra.mxu1 %v6193_v38  ;;  %3548 = vmatprep.mubr.f32.mxu1 %v6510_v17 }
 0x41b   : > { %4250 = vmatprep.subr.bf16.mxu1 %v6225_v54 }
 0x41d   : > { %3552 = vmatmul.mubr.f32.vlgmr.msra.gmra.mrb[40].mxu1 %v6616_v44 }
 0x41e   : > { %4252 = vmatpush1.bf16.msra.mxu1 %v6231_v1  ;;  %3557 = vmatprep.mubr.f32.mxu1 %v6510_v17 }
 0x41f   : > { %4254 = vmatprep.subr.bf16.mxu1 %v6237_v58 }
 0x421   : > { %3561 = vmatmul.mubr.f32.gmra.mrb[42].mxu1 %v6617_v61 }
 0x422   : > { %4256 = vmatpush1.bf16.msra.mxu1 %v6245_v46  ;;  %3566 = vmatprep.mubr.f32.mxu1 %v6510_v17 }
 0x423   : > { %4258 = vmatprep.subr.bf16.mxu1 %v6249_v14 }
 0x425   : > { %3570 = vmatmul.mubr.f32.gmra.mrb[44].mxu1 %v3146_v10 }
 0x426   : > { %4260 = vmatpush1.bf16.msra.mxu1 %v6253_v33  ;;  %3575 = vmatprep.mubr.f32.mxu1 %v6510_v17 }
 0x427   : > { %4262 = vmatprep.subr.bf16.mxu1 %v6255_v50 }
 0x429   : > { %3579 = vmatmul.mubr.f32.gmra.mrb[46].mxu1 %v3157_v60 }
 0x42a   : > { %4264 = vmatpush1.bf16.msra.mxu1 %v6257_v35  ;;  %3697 = vmatprep.mubr.f32.mxu1 %v6510_v17 }
 0x42b   : > { %4266 = vmatprep.subr.bf16.mxu1 %v6101_v13  ;;  %v3026_v13 = vpop.permute.xlu1 %3025 }
 0x42d   : > { %3699 = vmatmul.mubr.f32.vlgmr.msra.gmra.mrb[40].mxu1 %v6044_v8 }
 0x42e   : > { %4268 = vmatpush1.bf16.msra.mxu1 %v6095_v42  ;;  %3704 = vmatprep.mubr.f32.mxu1 %v6510_v17 }
 0x42f   : > { %4270 = vmatprep.subr.bf16.mxu1 %v6137_v25  ;;  %v3855_v25 = vpop.permute.xlu1 %3854 }
 0x431   : > { %3706 = vmatmul.mubr.f32.gmra.mrb[42].mxu1 %v6046_v55 }
 0x432   : > { %4272 = vmatpush1.bf16.msra.mxu1 %v6131_v3  ;;  %3711 = vmatprep.mubr.f32.mxu1 %v6510_v17  ;;  %v3850_v3 = vpop.permute.xlu0 %3849 }
 0x433   : > { %4274 = vmatprep.subr.bf16.mxu1 %v6174_v23  ;;  %v3865_v16 = vpop.permute.xlu1 %3864 }
 0x435   : > { %3713 = vmatmul.mubr.f32.gmra.mrb[44].mxu1 %v6065_v9 }
 0x436   : > { %4276 = vmatpush1.bf16.msra.mxu1 %v6168_v51  ;;  %3718 = vmatprep.mubr.f32.mxu1 %v6510_v17  ;;  %v3860_v20 = vpop.permute.xlu0 %3859 }
 0x437   : > { %4278 = vmatprep.subr.bf16.mxu1 %v6200_v32 }
 0x439   : > { %3720 = vmatmul.mubr.f32.gmra.mrb[46].mxu1 %v6090_v26 }
 0x43a   : > { %4280 = vmatpush1.bf16.msra.mxu1 %v6193_v38  ;;  %3806 = vmatprep.mubr.f32.mxu1 %v6510_v17  ;;  %v3897_v30 = vpop.permute.xlu0 %3896 }
 0x43b   : > { %v3902_v29 = vrot.slane %v3897_v30, %v3901_v63 }
 0x43d   : > { %3808 = vmatmul.mubr.f32.vlgmr.msra.gmra.mrb[40].mxu1 %v6044_v8 }
 0x43e   : > { %3813 = vmatprep.mubr.f32.mxu1 %v6510_v17 }
 0x441   : > { %3815 = vmatmul.mubr.f32.gmra.mrb[42].mxu1 %v6046_v55 }
 0x442   : > { %3820 = vmatprep.mubr.f32.mxu1 %v6510_v17 }
 0x445   : > { %3822 = vmatmul.mubr.f32.gmra.mrb[44].mxu1 %v6065_v9 }
 0x446   : > { %3827 = vmatprep.mubr.f32.mxu1 %v6510_v17 }
 0x449   : > { %3829 = vmatmul.mubr.f32.gmra.mrb[46].mxu1 %v6090_v26 }
 0x510   : > { %v3809_v42 = vpop.f32.mrb[40].mxu1 }
 0x511   : > { %v4355_v52 = vadd.f32 %v3809_v42, %v3011_v6  ;;  %v3811_v21 = vpop.f32.mrb[41].mxu1 }
 0x512   : > { %v4356_v8 = vadd.f32 %v3811_v21, %v3011_v6 }
 0x513   : > { %v3835_v0 = vmax.f32 %v4355_v52, 0.0 }
 0x514   : > { %v3816_v4 = vpop.f32.mrb[42].mxu1  ;;  %v3836_v2 = vmax.f32 %v4356_v8, 0.0 }
 0x515   : > { %v4357_v23 = vadd.f32 %v3816_v4, %v3016_v31  ;;  %v3818_v55 = vpop.f32.mrb[43].mxu1  ;;  %v3867_v26 = vmul.f32 %v3850_v3, %v3835_v0 }
 0x516   : > { %v4358_v47 = vadd.f32 %v3818_v55, %v3016_v31  ;;  %v3868_v36 = vmul.f32 %v3850_v3, %v3836_v2  ;;  %v4646_v31 = vmov 1966171168  }
 0x517   : > { %v3837_v9 = vmax.f32 %v4357_v23, 0.0 }
 0x518   : > { %v3838_v17 = vmax.f32 %v4358_v47, 0.0  ;;  %v3823_v10 = vpop.f32.mrb[44].mxu1 }
 0x519   : > { %v3869_v51 = vmul.f32 %v3855_v25, %v3837_v9  ;;  %v4359_v7 = vadd.f32 %v3823_v10, %v3021_v5  ;;  %v3825_v19 = vpop.f32.mrb[45].mxu1 }
 0x51a   : > { %v3870_v38 = vmul.f32 %v3855_v25, %v3838_v17  ;;  %v4360_v32 = vadd.f32 %v3825_v19, %v3021_v5  ;;  %v3911_v5 = vunpack.c.l.s4 %v4646_v31 }
 0x51b   : > { %v3875_v15 = vadd.f32 %v3869_v51, %v3867_v26  ;;  %v3839_v48 = vmax.f32 %v4359_v7, 0.0 }
 0x51c   : > { %v3884_v24 = vadd.f32 %v3870_v38, %v3868_v36  ;;  %v3840_v45 = vmax.f32 %v4360_v32, 0.0  ;;  %v3830_v37 = vpop.f32.mrb[46].mxu1  ;;  %v3912_v42 = vunpack.c.0.s8 %v3911_v5 }
 0x51d   : > { %v3871_v41 = vmul.f32 %v3860_v20, %v3839_v48  ;;  %v4361_v56 = vadd.f32 %v3830_v37, %v3026_v13  ;;  %v3832_v54 = vpop.f32.mrb[47].mxu1 }
 0x51e   : > { %v3872_v1 = vmul.f32 %v3860_v20, %v3840_v45  ;;  %v4362_v58 = vadd.f32 %v3832_v54, %v3026_v13  ;;  %v3915_v21 = vsub.s32 %v3912_v42, %v3900_v27 }
 0x51f   : > { %v3876_v12 = vadd.f32 %v3875_v15, %v3871_v41  ;;  %v3841_v46 = vmax.f32 %v4361_v56, 0.0 }
 0x520   : > { %v3885_v14 = vadd.f32 %v3884_v24, %v3872_v1  ;;  %v3842_v34 = vmax.f32 %v4362_v58, 0.0 }
 0x521   : > { %v3873_v33 = vmul.f32 %v3865_v16, %v3841_v46 }
 0x522   : > { %v3874_v40 = vmul.f32 %v3865_v16, %v3842_v34 }
 0x523   : > { %v3877_v50 = vadd.f32 %v3876_v12, %v3873_v33 }
 0x524   : > { %v3886_v35 = vadd.f32 %v3885_v14, %v3874_v40 }
 0x525   : > { %v3878_v49 = vrot.slane %v3877_v50, 4 }
 0x526   : > { %v3887_v11 = vrot.slane %v3886_v35, 4 }
 0x527   : > { %v3879_v43 = vadd.f32 %v3878_v49, %v3877_v50 }
 0x528   : > { %v3888_v60 = vadd.f32 %v3887_v11, %v3886_v35 }
 0x529   : > { %v3880_v53 = vrot.slane %v3879_v43, 2 }
 0x52a   : > { %v3889_v57 = vrot.slane %v3888_v60, 2 }
 0x52b   : > { %v3881_v22 = vadd.f32 %v3880_v53, %v3879_v43 }
 0x52c   : > { %v3890_v28 = vadd.f32 %v3889_v57, %v3888_v60 }
 0x52d   : > { %v3882_v62 = vrot.slane %v3881_v22, 1 }
 0x52e   : > { %v3891_v59 = vrot.slane %v3890_v28, 1 }
 0x52f   : > { %v3883_v39 = vadd.f32 %v3882_v62, %v3881_v22 }
 0x530   : > { %v3892_v44 = vadd.f32 %v3891_v59, %v3890_v28 }
 0x531   : > { %v3903_v61 = vadd.f32 %v3902_v29, %v3883_v39 }
 0x532   : > { %v3904_v6 = vadd.f32 %v3902_v29, %v3892_v44 }
 0x533   : > { %4632 = vtanh.f32 %v3903_v61 }
 0x534   : > { %4634 = vtanh.f32 %v3904_v6 }
 0x53d   : > { %v4633_v52 = vpop.eup %4632 }
 0x53e   : > { %v4635_v13 = vpop.eup %4634 }
 0x53f   : > { %v3909_v8 = vcombine.low %v4633_v52, %v4635_v13 }
 0x541   : > { %v3916_v4 = vrot.slane %v3909_v8, %v3915_v21 }
 0x543   : > { %v3923_v0 = vrot.slane %v3916_v4, %v3915_v21 }
 0x545   : > { %3929 = vst.msk [vmem:[%s334_s20] sm:$0x3] %vm3927_vm2, %v3923_v0 }
 0x546 PF: > { %s21_s11 = sadd.s32 1, %s4642_s11  }
 0x547   : > { %p18_p5 = scmp.ge.s32.totalorder %s21_s11, 4  }
 0x549   :  { %20 = sbr.rel (!%p18_p5) target bundleno = 3 (0x3), region = 86 }

</bundles_post_ra>
